<compile_context>
chip_gen: v6e
topology: v6e:2x2x1
jax: 0.10.0
libtpu: 0.0.40
codegen_flags: <defaults>
</compile_context>

<pallas_src>
import math
import functools

import jax
import jax.numpy as jnp
from jax.experimental import pallas as pl
from jax.experimental.pallas import tpu as pltpu


# ----------------------------------------------------------------------------
# helpers
# ----------------------------------------------------------------------------
def _gelu_exact(x):
    # PyTorch F.gelu default ('none' approximation) = erf-based gelu.
    return 0.5 * x * (1.0 + jax.lax.erf(x * 0.7071067811865476))


def _layer_norm(y, g, b, eps=1e-5):
    mu = jnp.mean(y, axis=-1, keepdims=True)
    yc = y - mu
    var = jnp.mean(yc * yc, axis=-1, keepdims=True)
    return yc * jax.lax.rsqrt(var + eps) * g + b


def _tree_sum(xs):
    xs = list(xs)
    while len(xs) > 1:
        nxt = [xs[i] + xs[i + 1] for i in range(0, len(xs) - 1, 2)]
        if len(xs) % 2:
            nxt.append(xs[-1])
        xs = nxt
    return xs[0]


def fixed_positional_encoding(max_len, d_model):
    position = jnp.arange(max_len, dtype=jnp.float32)[:, None]
    div_term = jnp.exp(
        jnp.arange(0, d_model, 2, dtype=jnp.float32) * (-math.log(10000.0) / d_model)
    )
    pe = jnp.zeros((max_len, d_model), jnp.float32)
    pe = pe.at[:, 0::2].set(jnp.sin(position * div_term))
    pe = pe.at[:, 1::2].set(jnp.cos(position * div_term))
    return pe


# ----------------------------------------------------------------------------
# fused kernel: grid = (batch_blocks [parallel], num_layers [arbitrary])
# ----------------------------------------------------------------------------
def fused_encoder_kernel(
    x_ref, pe_ref, keepk_ref, keepd_ref,
    w_in_ref, b_in_ref,
    wq_ref, wk_ref, wv_ref, bq_ref, bk_ref, bv_ref,
    wo_ref, bo_ref,
    w1_ref, b1_ref, w2_ref, b2_ref,
    g1_ref, be1_ref, g2_ref, be2_ref,
    w_head_ref, b_head_ref,
    o_ref,
    x_scr,
    *, S, D, H, Dh, scale_in, scale_attn,
):
    l = pl.program_id(1)
    n_layers = pl.num_programs(1)
    bb = x_ref.shape[0]
    cdt = wq_ref.dtype                       # matmul operand dtype (bf16)

    # ---- l == 0: input projection * sqrt(D) + positional encoding -> scratch ----
    @pl.when(l == 0)
    def _():
        x2 = x_ref[...].reshape(bb * S, x_ref.shape[-1]).astype(cdt)
        y = jnp.dot(x2, w_in_ref[...], preferred_element_type=jnp.float32)
        y = (y + b_in_ref[...]) * scale_in
        x_scr[...] = y.reshape(bb, S, D) + pe_ref[...]

    # ---- encoder layer l (post-norm TransformerEncoderLayer, dropout = id) ----
    x2 = x_scr[...].reshape(bb * S, D)       # (bb*S, D) f32 residual stream
    x2c = x2.astype(cdt)

    # full-width projections: contraction depth D, lane-dense output width D
    q = jnp.dot(x2c, wq_ref[0], preferred_element_type=jnp.float32) + bq_ref[0]
    k = jnp.dot(x2c, wk_ref[0], preferred_element_type=jnp.float32) + bk_ref[0]
    v = jnp.dot(x2c, wv_ref[0], preferred_element_type=jnp.float32) + bv_ref[0]

    q3 = (q * scale_attn).astype(cdt).reshape(bb, S, D)   # fold 1/sqrt(Dh) into q
    k3 = k.astype(cdt).reshape(bb, S, D)
    v3 = v.astype(cdt).reshape(bb, S, D)

    # additive key-padding bias (0 = keep, -1e30 = pad), broadcast over queries
    bias = (keepk_ref[...] - 1.0) * 1e30                  # (bb, 1, S)

    wo_l = wo_ref[0]                                      # (H, Dh, D), single copy
    attn2 = jnp.zeros((bb * S, D), jnp.float32)
    for h in range(H):
        sl = slice(h * Dh, (h + 1) * Dh)
        s = jnp.einsum('bqd,bkd->bqk', q3[:, :, sl], k3[:, :, sl],
                       preferred_element_type=jnp.float32) + bias
        s = s - jnp.max(s, axis=-1, keepdims=True)
        p = jnp.exp(s)
        p = p * pl.reciprocal(jnp.sum(p, axis=-1, keepdims=True), approx=True)
        ctx = jnp.einsum('bqk,bkd->bqd', p.astype(cdt), v3[:, :, sl],
                         preferred_element_type=jnp.float32)        # (bb, S, Dh)
        # head-concat folded into the output projection (row block h of W_o)
        attn2 = attn2 + jnp.dot(ctx.reshape(bb * S, Dh).astype(cdt), wo_l[h],
                                preferred_element_type=jnp.float32)
    attn2 = attn2 + bo_ref[0]

    x1 = _layer_norm(x2 + attn2, g1_ref[0], be1_ref[0])             # (bb*S, D)

    # feed-forward
    h1 = jnp.dot(x1.astype(cdt), w1_ref[0],
                 preferred_element_type=jnp.float32) + b1_ref[0]
    h1 = _gelu_exact(h1)
    h2 = jnp.dot(h1.astype(cdt), w2_ref[0],
                 preferred_element_type=jnp.float32) + b2_ref[0]
    xo = _layer_norm(x1 + h2, g2_ref[0], be2_ref[0])                # (bb*S, D)

    x_scr[...] = xo.reshape(bb, S, D)

    # ---- l == L-1: gelu -> zero padded positions -> flatten-Linear -> sigmoid ----
    @pl.when(l == n_layers - 1)
    def _():
        hfin = _gelu_exact(xo.reshape(bb, S, D)) * keepd_ref[...]   # (bb, S, D)
        w3 = w_head_ref[...]                                        # (S, D, Cp)
        parts = [
            jnp.dot(hfin[:, si, :].astype(cdt), w3[si],
                    preferred_element_type=jnp.float32)
            for si in range(S)
        ]
        logits = _tree_sum(parts) + b_head_ref[...]                 # (bb, Cp)
        o_ref[...] = jax.nn.sigmoid(logits).reshape(
            bb, 1, o_ref.shape[-1]).astype(o_ref.dtype)


# ----------------------------------------------------------------------------
# parameter construction (deterministic synthetic init, "natural" layout)
# ----------------------------------------------------------------------------
def init_params(key, feat_dim, max_len, d_model, n_heads, num_layers,
                dim_feedforward, num_classes):
    def dense(k, fan_in, fan_out, scale=0.05):
        kw, kb = jax.random.split(k)
        return (scale * jax.random.normal(kw, (fan_in, fan_out), jnp.float32),
                scale * jax.random.normal(kb, (1, fan_out), jnp.float32))

    keys = jax.random.split(key, 2 + num_layers)
    params = {}
    params["w_in"], params["b_in"] = dense(keys[0], feat_dim, d_model)
    params["w_out"], params["b_out"] = dense(keys[1], d_model * max_len, num_classes)

    layers = []
    for l in range(num_layers):
        ks = jax.random.split(keys[2 + l], 4)
        wqkv, bqkv = dense(ks[0], d_model, 3 * d_model)
        wo, bo = dense(ks[1], d_model, d_model)
        w1, b1 = dense(ks[2], d_model, dim_feedforward)
        w2, b2 = dense(ks[3], dim_feedforward, d_model)
        layers.append(dict(
            wqkv=wqkv, bqkv=bqkv, wo=wo, bo=bo, w1=w1, b1=b1, w2=w2, b2=b2,
            g1=jnp.ones((1, d_model), jnp.float32),
            be1=jnp.zeros((1, d_model), jnp.float32),
            g2=jnp.ones((1, d_model), jnp.float32),
            be2=jnp.zeros((1, d_model), jnp.float32),
        ))
    params["layers"] = layers
    return params


# ----------------------------------------------------------------------------
# full forward (inference; dropouts are identity)
# ----------------------------------------------------------------------------
def forward(params, X, padding_masks, *, d_model, n_heads, max_len,
            batch_block=1, compute_dtype=jnp.bfloat16):
    B, S, F = X.shape
    assert S == max_len
    D, H = d_model, n_heads
    assert D % H == 0
    Dh = D // H
    L = len(params["layers"])
    C = params["b_out"].shape[-1]
    Cp = ((C + 127) // 128) * 128              # lane-dense output width
    Fff = params["layers"][0]["w1"].shape[-1]

    bb = batch_block
    assert B % bb == 0
    nb = B // bb
    cdt = compute_dtype

    # ---- wrapper-side packing: single-copy weights, no batch/head broadcast ----
    pe = fixed_positional_encoding(max_len, D)                       # (S, D)
    x3 = X.astype(jnp.float32)                                       # (B, S, F)

    keep = padding_masks.astype(jnp.float32)                         # (B, S), 1 = keep
    keep_k = keep.reshape(B, 1, S)                                   # key-bias mask
    keep_d = jnp.broadcast_to(keep[:, :, None], (B, S, D))           # lane-dense mask

    w_in = params["w_in"].astype(cdt)                                # (F, D)
    b_in = params["b_in"].reshape(1, D)                              # (1, D) f32

    def stack(name):
        return jnp.stack([lp[name] for lp in params["layers"]], axis=0)

    wqkv = stack("wqkv")                                             # (L, D, 3D)
    bqkv = stack("bqkv")                                             # (L, 1, 3D)
    wq = wqkv[:, :, 0 * D:1 * D].astype(cdt)
    wk = wqkv[:, :, 1 * D:2 * D].astype(cdt)
    wv = wqkv[:, :, 2 * D:3 * D].astype(cdt)
    bq = bqkv[:, :, 0 * D:1 * D]
    bk = bqkv[:, :, 1 * D:2 * D]
    bv = bqkv[:, :, 2 * D:3 * D]

    # output projection rows grouped per head -> kernel never lane/sublane-slices it
    wo = stack("wo").reshape(L, H, Dh, D).astype(cdt)                # (L, H, Dh, D)
    bo = stack("bo").reshape(L, 1, D)

    w1 = stack("w1").astype(cdt)                                     # (L, D, Fff)
    b1 = stack("b1").reshape(L, 1, Fff)
    w2 = stack("w2").astype(cdt)                                     # (L, Fff, D)
    b2 = stack("b2").reshape(L, 1, D)
    g1 = stack("g1").reshape(L, 1, D)
    be1 = stack("be1").reshape(L, 1, D)
    g2 = stack("g2").reshape(L, 1, D)
    be2 = stack("be2").reshape(L, 1, D)

    w_head = jnp.pad(params["w_out"].reshape(S, D, C),
                     ((0, 0), (0, 0), (0, Cp - C))).astype(cdt)      # (S, D, Cp)
    b_head = jnp.pad(params["b_out"], ((0, 0), (0, Cp - C)))         # (1, Cp) f32

    kernel = functools.partial(
        fused_encoder_kernel,
        S=S, D=D, H=H, Dh=Dh,
        scale_in=math.sqrt(D), scale_attn=1.0 / math.sqrt(Dh),
    )

    def const_spec(shape):
        n = len(shape)
        return pl.BlockSpec(tuple(shape), lambda b, l, n=n: (0,) * n)

    def batch_spec(block):
        n = len(block)
        return pl.BlockSpec(tuple(block), lambda b, l, n=n: (b,) + (0,) * (n - 1))

    def layer_spec(block):
        n = len(block)
        return pl.BlockSpec(tuple(block), lambda b, l, n=n: (l,) + (0,) * (n - 1))

    inputs = (x3, pe, keep_k, keep_d, w_in, b_in,
              wq, wk, wv, bq, bk, bv, wo, bo,
              w1, b1, w2, b2, g1, be1, g2, be2,
              w_head, b_head)

    in_specs = [
        batch_spec((bb, S, F)),
        const_spec((S, D)),
        batch_spec((bb, 1, S)),
        batch_spec((bb, S, D)),
        const_spec((F, D)),
        const_spec((1, D)),
        layer_spec((1, D, D)), layer_spec((1, D, D)), layer_spec((1, D, D)),
        layer_spec((1, 1, D)), layer_spec((1, 1, D)), layer_spec((1, 1, D)),
        layer_spec((1, H, Dh, D)),
        layer_spec((1, 1, D)),
        layer_spec((1, D, Fff)),
        layer_spec((1, 1, Fff)),
        layer_spec((1, Fff, D)),
        layer_spec((1, 1, D)),
        layer_spec((1, 1, D)), layer_spec((1, 1, D)),
        layer_spec((1, 1, D)), layer_spec((1, 1, D)),
        const_spec((S, D, Cp)),
        const_spec((1, Cp)),
    ]

    out = pl.pallas_call(
        kernel,
        out_shape=jax.ShapeDtypeStruct((B, 1, Cp), jnp.float32),
        grid=(nb, L),
        in_specs=in_specs,
        out_specs=pl.BlockSpec((bb, 1, Cp), lambda b, l: (b, 0, 0)),
        scratch_shapes=[pltpu.VMEM((bb, S, D), jnp.float32)],
        compiler_params=pltpu.CompilerParams(
            dimension_semantics=("parallel", "arbitrary"),
            vmem_limit_bytes=32 * 1024 * 1024,
        ),
    )(*inputs)

    return out.reshape(B, Cp)[:, :C]


# ----------------------------------------------------------------------------
if __name__ == "__main__":
    feat_dim = 4
    max_len = 8
    d_model = 32
    n_heads = 4
    num_layers = 2
    dim_feedforward = 64
    num_classes = 1
    B = 2

    key = jax.random.PRNGKey(0)
    kx, kp = jax.random.split(key)

    X = jax.random.normal(kx, (B, max_len, feat_dim), jnp.float32)
    # last two positions of every sequence are padding
    padding_masks = jnp.concatenate(
        [jnp.ones((B, max_len - 2), jnp.bool_), jnp.zeros((B, 2), jnp.bool_)], axis=1
    )

    params = init_params(kp, feat_dim, max_len, d_model, n_heads, num_layers,
                         dim_feedforward, num_classes)

    out = forward(params, X, padding_masks,
                  d_model=d_model, n_heads=n_heads, max_len=max_len)
    out = jax.block_until_ready(out)
    assert out.shape == (B, num_classes)
    assert bool(jnp.all(jnp.isfinite(out)))
    print("KERNEL_OK")
</pallas_src>

<mosaic_0001>
module attributes {stable_mosaic.version = 11 : i64} {
  func.func @fused_encoder_kernel(%arg0: i32, %arg1: i32, %arg2: memref<1x8x4xf32, #tpu.memory_space<vmem>>, %arg3: memref<8x32xf32, #tpu.memory_space<vmem>>, %arg4: memref<1x1x8xf32, #tpu.memory_space<vmem>>, %arg5: memref<1x8x32xf32, #tpu.memory_space<vmem>>, %arg6: memref<4x32xbf16, #tpu.memory_space<vmem>>, %arg7: memref<1x32xf32, #tpu.memory_space<vmem>>, %arg8: memref<1x32x32xbf16, #tpu.memory_space<vmem>>, %arg9: memref<1x32x32xbf16, #tpu.memory_space<vmem>>, %arg10: memref<1x32x32xbf16, #tpu.memory_space<vmem>>, %arg11: memref<1x1x32xf32, #tpu.memory_space<vmem>>, %arg12: memref<1x1x32xf32, #tpu.memory_space<vmem>>, %arg13: memref<1x1x32xf32, #tpu.memory_space<vmem>>, %arg14: memref<1x4x8x32xbf16, #tpu.memory_space<vmem>>, %arg15: memref<1x1x32xf32, #tpu.memory_space<vmem>>, %arg16: memref<1x32x64xbf16, #tpu.memory_space<vmem>>, %arg17: memref<1x1x64xf32, #tpu.memory_space<vmem>>, %arg18: memref<1x64x32xbf16, #tpu.memory_space<vmem>>, %arg19: memref<1x1x32xf32, #tpu.memory_space<vmem>>, %arg20: memref<1x1x32xf32, #tpu.memory_space<vmem>>, %arg21: memref<1x1x32xf32, #tpu.memory_space<vmem>>, %arg22: memref<1x1x32xf32, #tpu.memory_space<vmem>>, %arg23: memref<1x1x32xf32, #tpu.memory_space<vmem>>, %arg24: memref<8x32x128xbf16, #tpu.memory_space<vmem>>, %arg25: memref<1x128xf32, #tpu.memory_space<vmem>>, %arg26: memref<1x1x128xf32, #tpu.memory_space<vmem>>, %arg27: memref<1x8x32xf32, #tpu.memory_space<vmem>>) attributes {dimension_semantics = [#tpu.dimension_semantics<parallel>, #tpu.dimension_semantics<arbitrary>], iteration_bounds = array<i64: 2, 2>, scalar_prefetch = 0 : i64, scratch_operands = 1 : i64, tpu.core_type = #tpu.core_type<tc>, window_params = [{transform_indices = @transform_0, window_bounds = array<i64: 1, 8, 4>}, {pipeline_mode = #tpu.pipeline_mode<synchronous>, transform_indices = @transform_1, window_bounds = array<i64: 8, 32>}, {transform_indices = @transform_2, window_bounds = array<i64: 1, 1, 8>}, {transform_indices = @transform_3, window_bounds = array<i64: 1, 8, 32>}, {pipeline_mode = #tpu.pipeline_mode<synchronous>, transform_indices = @transform_4, window_bounds = array<i64: 4, 32>}, {pipeline_mode = #tpu.pipeline_mode<synchronous>, transform_indices = @transform_5, window_bounds = array<i64: 1, 32>}, {transform_indices = @transform_6, window_bounds = array<i64: 1, 32, 32>}, {transform_indices = @transform_7, window_bounds = array<i64: 1, 32, 32>}, {transform_indices = @transform_8, window_bounds = array<i64: 1, 32, 32>}, {transform_indices = @transform_9, window_bounds = array<i64: 1, 1, 32>}, {transform_indices = @transform_10, window_bounds = array<i64: 1, 1, 32>}, {transform_indices = @transform_11, window_bounds = array<i64: 1, 1, 32>}, {transform_indices = @transform_12, window_bounds = array<i64: 1, 4, 8, 32>}, {transform_indices = @transform_13, window_bounds = array<i64: 1, 1, 32>}, {transform_indices = @transform_14, window_bounds = array<i64: 1, 32, 64>}, {transform_indices = @transform_15, window_bounds = array<i64: 1, 1, 64>}, {transform_indices = @transform_16, window_bounds = array<i64: 1, 64, 32>}, {transform_indices = @transform_17, window_bounds = array<i64: 1, 1, 32>}, {transform_indices = @transform_18, window_bounds = array<i64: 1, 1, 32>}, {transform_indices = @transform_19, window_bounds = array<i64: 1, 1, 32>}, {transform_indices = @transform_20, window_bounds = array<i64: 1, 1, 32>}, {transform_indices = @transform_21, window_bounds = array<i64: 1, 1, 32>}, {pipeline_mode = #tpu.pipeline_mode<synchronous>, transform_indices = @transform_22, window_bounds = array<i64: 8, 32, 128>}, {pipeline_mode = #tpu.pipeline_mode<synchronous>, transform_indices = @transform_23, window_bounds = array<i64: 1, 128>}, {transform_indices = @transform_24, window_bounds = array<i64: 1, 1, 128>}]} {
    %c0_i32 = arith.constant 0 : i32
    %0 = arith.cmpi eq, %arg1, %c0_i32 : i32
    %1 = arith.extui %0 : i1 to i32
    %c0_i32_0 = arith.constant 0 : i32
    %2 = arith.cmpi ne, %1, %c0_i32_0 : i32
    scf.if %2 {
      %c0_100 = arith.constant 0 : index
      %c0_101 = arith.constant 0 : index
      %c0_102 = arith.constant 0 : index
      %222 = vector.load %arg2[%c0_100, %c0_101, %c0_102] : memref<1x8x4xf32, #tpu.memory_space<vmem>>, vector<1x8x4xf32>
      %223 = vector.shape_cast %222 : vector<1x8x4xf32> to vector<8x4xf32>
      %224 = arith.truncf %223 : vector<8x4xf32> to vector<8x4xbf16>
      %c0_103 = arith.constant 0 : index
      %c0_104 = arith.constant 0 : index
      %225 = vector.load %arg6[%c0_103, %c0_104] : memref<4x32xbf16, #tpu.memory_space<vmem>>, vector<4x32xbf16>
      %cst_105 = arith.constant dense<0.000000e+00> : vector<8x32xf32>
      %226 = tpu.matmul %224, %225, %cst_105 {dimension_numbers = #tpu.dot_dimension_numbers<[1], [0], [0], [1], [0, 0, 1, 1], [], []>} : vector<8x4xbf16>, vector<4x32xbf16>, vector<8x32xf32> -> vector<8x32xf32>
      %c0_106 = arith.constant 0 : index
      %c0_107 = arith.constant 0 : index
      %227 = vector.load %arg7[%c0_106, %c0_107] : memref<1x32xf32, #tpu.memory_space<vmem>>, vector<1x32xf32>
      %228 = vector.broadcast %227 : vector<1x32xf32> to vector<8x32xf32>
      %229 = arith.addf %226, %228 : vector<8x32xf32>
      %cst_108 = arith.constant 5.65685415 : f32
      %230 = vector.broadcast %cst_108 : f32 to vector<8x32xf32>
      %231 = arith.mulf %229, %230 : vector<8x32xf32>
      %232 = vector.shape_cast %231 : vector<8x32xf32> to vector<1x8x32xf32>
      %c0_109 = arith.constant 0 : index
      %c0_110 = arith.constant 0 : index
      %233 = vector.load %arg3[%c0_109, %c0_110] : memref<8x32xf32, #tpu.memory_space<vmem>>, vector<8x32xf32>
      %234 = vector.shape_cast %233 : vector<8x32xf32> to vector<1x8x32xf32>
      %235 = arith.addf %232, %234 : vector<1x8x32xf32>
      %c0_111 = arith.constant 0 : index
      %c0_112 = arith.constant 0 : index
      %c0_113 = arith.constant 0 : index
      %236 = vector.load %arg27[%c0_111, %c0_112, %c0_113] : memref<1x8x32xf32, #tpu.memory_space<vmem>>, vector<1x8x32xf32>
      tpu.vector_store %arg27[%c0_111, %c0_112, %c0_113], %235 {strides = array<i32>} : memref<1x8x32xf32, #tpu.memory_space<vmem>>, vector<1x8x32xf32>,
    } else {
    }
    %c0 = arith.constant 0 : index
    %c0_1 = arith.constant 0 : index
    %c0_2 = arith.constant 0 : index
    %3 = vector.load %arg27[%c0, %c0_1, %c0_2] : memref<1x8x32xf32, #tpu.memory_space<vmem>>, vector<1x8x32xf32>
    %4 = vector.shape_cast %3 : vector<1x8x32xf32> to vector<8x32xf32>
    %5 = arith.truncf %4 : vector<8x32xf32> to vector<8x32xbf16>
    %c0_3 = arith.constant 0 : index
    %c0_4 = arith.constant 0 : index
    %c0_5 = arith.constant 0 : index
    %6 = vector.load %arg8[%c0_3, %c0_4, %c0_5] : memref<1x32x32xbf16, #tpu.memory_space<vmem>>, vector<1x32x32xbf16>
    %7 = vector.shape_cast %6 : vector<1x32x32xbf16> to vector<32x32xbf16>
    %cst = arith.constant dense<0.000000e+00> : vector<8x32xf32>
    %8 = tpu.matmul %5, %7, %cst {dimension_numbers = #tpu.dot_dimension_numbers<[1], [0], [0], [1], [0, 0, 1, 1], [], []>} : vector<8x32xbf16>, vector<32x32xbf16>, vector<8x32xf32> -> vector<8x32xf32>
    %c0_6 = arith.constant 0 : index
    %c0_7 = arith.constant 0 : index
    %c0_8 = arith.constant 0 : index
    %9 = vector.load %arg11[%c0_6, %c0_7, %c0_8] : memref<1x1x32xf32, #tpu.memory_space<vmem>>, vector<1x1x32xf32>
    %10 = vector.shape_cast %9 : vector<1x1x32xf32> to vector<1x32xf32>
    %11 = vector.broadcast %10 : vector<1x32xf32> to vector<8x32xf32>
    %12 = arith.addf %8, %11 : vector<8x32xf32>
    %c0_9 = arith.constant 0 : index
    %c0_10 = arith.constant 0 : index
    %c0_11 = arith.constant 0 : index
    %13 = vector.load %arg9[%c0_9, %c0_10, %c0_11] : memref<1x32x32xbf16, #tpu.memory_space<vmem>>, vector<1x32x32xbf16>
    %14 = vector.shape_cast %13 : vector<1x32x32xbf16> to vector<32x32xbf16>
    %cst_12 = arith.constant dense<0.000000e+00> : vector<8x32xf32>
    %15 = tpu.matmul %5, %14, %cst_12 {dimension_numbers = #tpu.dot_dimension_numbers<[1], [0], [0], [1], [0, 0, 1, 1], [], []>} : vector<8x32xbf16>, vector<32x32xbf16>, vector<8x32xf32> -> vector<8x32xf32>
    %c0_13 = arith.constant 0 : index
    %c0_14 = arith.constant 0 : index
    %c0_15 = arith.constant 0 : index
    %16 = vector.load %arg12[%c0_13, %c0_14, %c0_15] : memref<1x1x32xf32, #tpu.memory_space<vmem>>, vector<1x1x32xf32>
    %17 = vector.shape_cast %16 : vector<1x1x32xf32> to vector<1x32xf32>
    %18 = vector.broadcast %17 : vector<1x32xf32> to vector<8x32xf32>
    %19 = arith.addf %15, %18 : vector<8x32xf32>
    %c0_16 = arith.constant 0 : index
    %c0_17 = arith.constant 0 : index
    %c0_18 = arith.constant 0 : index
    %20 = vector.load %arg10[%c0_16, %c0_17, %c0_18] : memref<1x32x32xbf16, #tpu.memory_space<vmem>>, vector<1x32x32xbf16>
    %21 = vector.shape_cast %20 : vector<1x32x32xbf16> to vector<32x32xbf16>
    %cst_19 = arith.constant dense<0.000000e+00> : vector<8x32xf32>
    %22 = tpu.matmul %5, %21, %cst_19 {dimension_numbers = #tpu.dot_dimension_numbers<[1], [0], [0], [1], [0, 0, 1, 1], [], []>} : vector<8x32xbf16>, vector<32x32xbf16>, vector<8x32xf32> -> vector<8x32xf32>
    %c0_20 = arith.constant 0 : index
    %c0_21 = arith.constant 0 : index
    %c0_22 = arith.constant 0 : index
    %23 = vector.load %arg13[%c0_20, %c0_21, %c0_22] : memref<1x1x32xf32, #tpu.memory_space<vmem>>, vector<1x1x32xf32>
    %24 = vector.shape_cast %23 : vector<1x1x32xf32> to vector<1x32xf32>
    %25 = vector.broadcast %24 : vector<1x32xf32> to vector<8x32xf32>
    %26 = arith.addf %22, %25 : vector<8x32xf32>
    %cst_23 = arith.constant 0.353553385 : f32
    %27 = vector.broadcast %cst_23 : f32 to vector<8x32xf32>
    %28 = arith.mulf %12, %27 : vector<8x32xf32>
    %29 = arith.truncf %28 : vector<8x32xf32> to vector<8x32xbf16>
    %30 = vector.shape_cast %29 : vector<8x32xbf16> to vector<1x8x32xbf16>
    %31 = arith.truncf %19 : vector<8x32xf32> to vector<8x32xbf16>
    %32 = vector.shape_cast %31 : vector<8x32xbf16> to vector<1x8x32xbf16>
    %33 = arith.truncf %26 : vector<8x32xf32> to vector<8x32xbf16>
    %34 = vector.shape_cast %33 : vector<8x32xbf16> to vector<1x8x32xbf16>
    %c0_24 = arith.constant 0 : index
    %c0_25 = arith.constant 0 : index
    %c0_26 = arith.constant 0 : index
    %35 = vector.load %arg4[%c0_24, %c0_25, %c0_26] : memref<1x1x8xf32, #tpu.memory_space<vmem>>, vector<1x1x8xf32>
    %cst_27 = arith.constant 1.000000e+00 : f32
    %36 = vector.broadcast %cst_27 : f32 to vector<1x1x8xf32>
    %37 = arith.subf %35, %36 : vector<1x1x8xf32>
    %cst_28 = arith.constant 1.000000e+30 : f32
    %38 = vector.broadcast %cst_28 : f32 to vector<1x1x8xf32>
    %39 = arith.mulf %37, %38 : vector<1x1x8xf32>
    %c0_29 = arith.constant 0 : index
    %c0_30 = arith.constant 0 : index
    %c0_31 = arith.constant 0 : index
    %c0_32 = arith.constant 0 : index
    %40 = vector.load %arg14[%c0_29, %c0_30, %c0_31, %c0_32] : memref<1x4x8x32xbf16, #tpu.memory_space<vmem>>, vector<1x4x8x32xbf16>
    %41 = vector.shape_cast %40 : vector<1x4x8x32xbf16> to vector<4x8x32xbf16>
    %cst_33 = arith.constant 0.000000e+00 : f32
    %42 = vector.broadcast %cst_33 : f32 to vector<8x32xf32>
    %43 = vector.extract_strided_slice %30 {offsets = [0, 0, 0], sizes = [1, 8, 8], strides = [1, 1, 1]} : vector<1x8x32xbf16> to vector<1x8x8xbf16>
    %44 = vector.extract_strided_slice %32 {offsets = [0, 0, 0], sizes = [1, 8, 8], strides = [1, 1, 1]} : vector<1x8x32xbf16> to vector<1x8x8xbf16>
    "tpu.trace_start"() <{level = 10 : i32, message = "bqd,bkd->bqk"}> : () -> ()
    %cst_34 = arith.constant dense<0.000000e+00> : vector<1x8x8xf32>
    %45 = tpu.matmul %43, %44, %cst_34 {dimension_numbers = #tpu.dot_dimension_numbers<[2], [2], [1], [1], [0, 0, 0, 1, 1, 1], [0], [0]>} : vector<1x8x8xbf16>, vector<1x8x8xbf16>, vector<1x8x8xf32> -> vector<1x8x8xf32>
    "tpu.trace_stop"() : () -> ()
    %46 = vector.broadcast %39 : vector<1x1x8xf32> to vector<1x8x8xf32>
    %47 = arith.addf %45, %46 : vector<1x8x8xf32>
    %cst_35 = arith.constant dense<0xFF800000> : vector<1x8xf32>
    %48 = vector.multi_reduction <maximumf>, %47, %cst_35 [2] : vector<1x8x8xf32> to vector<1x8xf32>
    %49 = vector.shape_cast %48 : vector<1x8xf32> to vector<1x8x1xf32>
    %50 = vector.broadcast %49 : vector<1x8x1xf32> to vector<1x8x8xf32>
    %51 = arith.subf %47, %50 : vector<1x8x8xf32>
    %52 = math.exp %51 : vector<1x8x8xf32>
    %cst_36 = arith.constant dense<0.000000e+00> : vector<1x8xf32>
    %53 = vector.multi_reduction <add>, %52, %cst_36 [2] : vector<1x8x8xf32> to vector<1x8xf32>
    %54 = vector.shape_cast %53 : vector<1x8xf32> to vector<1x8x1xf32>
    %55 = tpu.reciprocal %54 {approx = true} : vector<1x8x1xf32> -> vector<1x8x1xf32>
    %56 = vector.broadcast %55 : vector<1x8x1xf32> to vector<1x8x8xf32>
    %57 = arith.mulf %52, %56 : vector<1x8x8xf32>
    %58 = arith.truncf %57 : vector<1x8x8xf32> to vector<1x8x8xbf16>
    %59 = vector.extract_strided_slice %34 {offsets = [0, 0, 0], sizes = [1, 8, 8], strides = [1, 1, 1]} : vector<1x8x32xbf16> to vector<1x8x8xbf16>
    "tpu.trace_start"() <{level = 10 : i32, message = "bqk,bkd->bqd"}> : () -> ()
    %cst_37 = arith.constant dense<0.000000e+00> : vector<1x8x8xf32>
    %60 = tpu.matmul %58, %59, %cst_37 {dimension_numbers = #tpu.dot_dimension_numbers<[2], [1], [1], [2], [0, 0, 0, 1, 1, 2], [0], [0]>} : vector<1x8x8xbf16>, vector<1x8x8xbf16>, vector<1x8x8xf32> -> vector<1x8x8xf32>
    "tpu.trace_stop"() : () -> ()
    %61 = vector.shape_cast %60 : vector<1x8x8xf32> to vector<8x8xf32>
    %62 = arith.truncf %61 : vector<8x8xf32> to vector<8x8xbf16>
    %63 = vector.extract_strided_slice %41 {offsets = [0, 0, 0], sizes = [1, 8, 32], strides = [1, 1, 1]} : vector<4x8x32xbf16> to vector<1x8x32xbf16>
    %64 = vector.shape_cast %63 : vector<1x8x32xbf16> to vector<8x32xbf16>
    %cst_38 = arith.constant dense<0.000000e+00> : vector<8x32xf32>
    %65 = tpu.matmul %62, %64, %cst_38 {dimension_numbers = #tpu.dot_dimension_numbers<[1], [0], [0], [1], [0, 0, 1, 1], [], []>} : vector<8x8xbf16>, vector<8x32xbf16>, vector<8x32xf32> -> vector<8x32xf32>
    %66 = arith.addf %42, %65 : vector<8x32xf32>
    %67 = vector.extract_strided_slice %30 {offsets = [0, 0, 8], sizes = [1, 8, 8], strides = [1, 1, 1]} : vector<1x8x32xbf16> to vector<1x8x8xbf16>
    %68 = vector.extract_strided_slice %32 {offsets = [0, 0, 8], sizes = [1, 8, 8], strides = [1, 1, 1]} : vector<1x8x32xbf16> to vector<1x8x8xbf16>
    "tpu.trace_start"() <{level = 10 : i32, message = "bqd,bkd->bqk"}> : () -> ()
    %cst_39 = arith.constant dense<0.000000e+00> : vector<1x8x8xf32>
    %69 = tpu.matmul %67, %68, %cst_39 {dimension_numbers = #tpu.dot_dimension_numbers<[2], [2], [1], [1], [0, 0, 0, 1, 1, 1], [0], [0]>} : vector<1x8x8xbf16>, vector<1x8x8xbf16>, vector<1x8x8xf32> -> vector<1x8x8xf32>
    "tpu.trace_stop"() : () -> ()
    %70 = vector.broadcast %39 : vector<1x1x8xf32> to vector<1x8x8xf32>
    %71 = arith.addf %69, %70 : vector<1x8x8xf32>
    %cst_40 = arith.constant dense<0xFF800000> : vector<1x8xf32>
    %72 = vector.multi_reduction <maximumf>, %71, %cst_40 [2] : vector<1x8x8xf32> to vector<1x8xf32>
    %73 = vector.shape_cast %72 : vector<1x8xf32> to vector<1x8x1xf32>
    %74 = vector.broadcast %73 : vector<1x8x1xf32> to vector<1x8x8xf32>
    %75 = arith.subf %71, %74 : vector<1x8x8xf32>
    %76 = math.exp %75 : vector<1x8x8xf32>
    %cst_41 = arith.constant dense<0.000000e+00> : vector<1x8xf32>
    %77 = vector.multi_reduction <add>, %76, %cst_41 [2] : vector<1x8x8xf32> to vector<1x8xf32>
    %78 = vector.shape_cast %77 : vector<1x8xf32> to vector<1x8x1xf32>
    %79 = tpu.reciprocal %78 {approx = true} : vector<1x8x1xf32> -> vector<1x8x1xf32>
    %80 = vector.broadcast %79 : vector<1x8x1xf32> to vector<1x8x8xf32>
    %81 = arith.mulf %76, %80 : vector<1x8x8xf32>
    %82 = arith.truncf %81 : vector<1x8x8xf32> to vector<1x8x8xbf16>
    %83 = vector.extract_strided_slice %34 {offsets = [0, 0, 8], sizes = [1, 8, 8], strides = [1, 1, 1]} : vector<1x8x32xbf16> to vector<1x8x8xbf16>
    "tpu.trace_start"() <{level = 10 : i32, message = "bqk,bkd->bqd"}> : () -> ()
    %cst_42 = arith.constant dense<0.000000e+00> : vector<1x8x8xf32>
    %84 = tpu.matmul %82, %83, %cst_42 {dimension_numbers = #tpu.dot_dimension_numbers<[2], [1], [1], [2], [0, 0, 0, 1, 1, 2], [0], [0]>} : vector<1x8x8xbf16>, vector<1x8x8xbf16>, vector<1x8x8xf32> -> vector<1x8x8xf32>
    "tpu.trace_stop"() : () -> ()
    %85 = vector.shape_cast %84 : vector<1x8x8xf32> to vector<8x8xf32>
    %86 = arith.truncf %85 : vector<8x8xf32> to vector<8x8xbf16>
    %87 = vector.extract_strided_slice %41 {offsets = [1, 0, 0], sizes = [1, 8, 32], strides = [1, 1, 1]} : vector<4x8x32xbf16> to vector<1x8x32xbf16>
    %88 = vector.shape_cast %87 : vector<1x8x32xbf16> to vector<8x32xbf16>
    %cst_43 = arith.constant dense<0.000000e+00> : vector<8x32xf32>
    %89 = tpu.matmul %86, %88, %cst_43 {dimension_numbers = #tpu.dot_dimension_numbers<[1], [0], [0], [1], [0, 0, 1, 1], [], []>} : vector<8x8xbf16>, vector<8x32xbf16>, vector<8x32xf32> -> vector<8x32xf32>
    %90 = arith.addf %66, %89 : vector<8x32xf32>
    %91 = vector.extract_strided_slice %30 {offsets = [0, 0, 16], sizes = [1, 8, 8], strides = [1, 1, 1]} : vector<1x8x32xbf16> to vector<1x8x8xbf16>
    %92 = vector.extract_strided_slice %32 {offsets = [0, 0, 16], sizes = [1, 8, 8], strides = [1, 1, 1]} : vector<1x8x32xbf16> to vector<1x8x8xbf16>
    "tpu.trace_start"() <{level = 10 : i32, message = "bqd,bkd->bqk"}> : () -> ()
    %cst_44 = arith.constant dense<0.000000e+00> : vector<1x8x8xf32>
    %93 = tpu.matmul %91, %92, %cst_44 {dimension_numbers = #tpu.dot_dimension_numbers<[2], [2], [1], [1], [0, 0, 0, 1, 1, 1], [0], [0]>} : vector<1x8x8xbf16>, vector<1x8x8xbf16>, vector<1x8x8xf32> -> vector<1x8x8xf32>
    "tpu.trace_stop"() : () -> ()
    %94 = vector.broadcast %39 : vector<1x1x8xf32> to vector<1x8x8xf32>
    %95 = arith.addf %93, %94 : vector<1x8x8xf32>
    %cst_45 = arith.constant dense<0xFF800000> : vector<1x8xf32>
    %96 = vector.multi_reduction <maximumf>, %95, %cst_45 [2] : vector<1x8x8xf32> to vector<1x8xf32>
    %97 = vector.shape_cast %96 : vector<1x8xf32> to vector<1x8x1xf32>
    %98 = vector.broadcast %97 : vector<1x8x1xf32> to vector<1x8x8xf32>
    %99 = arith.subf %95, %98 : vector<1x8x8xf32>
    %100 = math.exp %99 : vector<1x8x8xf32>
    %cst_46 = arith.constant dense<0.000000e+00> : vector<1x8xf32>
    %101 = vector.multi_reduction <add>, %100, %cst_46 [2] : vector<1x8x8xf32> to vector<1x8xf32>
    %102 = vector.shape_cast %101 : vector<1x8xf32> to vector<1x8x1xf32>
    %103 = tpu.reciprocal %102 {approx = true} : vector<1x8x1xf32> -> vector<1x8x1xf32>
    %104 = vector.broadcast %103 : vector<1x8x1xf32> to vector<1x8x8xf32>
    %105 = arith.mulf %100, %104 : vector<1x8x8xf32>
    %106 = arith.truncf %105 : vector<1x8x8xf32> to vector<1x8x8xbf16>
    %107 = vector.extract_strided_slice %34 {offsets = [0, 0, 16], sizes = [1, 8, 8], strides = [1, 1, 1]} : vector<1x8x32xbf16> to vector<1x8x8xbf16>
    "tpu.trace_start"() <{level = 10 : i32, message = "bqk,bkd->bqd"}> : () -> ()
    %cst_47 = arith.constant dense<0.000000e+00> : vector<1x8x8xf32>
    %108 = tpu.matmul %106, %107, %cst_47 {dimension_numbers = #tpu.dot_dimension_numbers<[2], [1], [1], [2], [0, 0, 0, 1, 1, 2], [0], [0]>} : vector<1x8x8xbf16>, vector<1x8x8xbf16>, vector<1x8x8xf32> -> vector<1x8x8xf32>
    "tpu.trace_stop"() : () -> ()
    %109 = vector.shape_cast %108 : vector<1x8x8xf32> to vector<8x8xf32>
    %110 = arith.truncf %109 : vector<8x8xf32> to vector<8x8xbf16>
    %111 = vector.extract_strided_slice %41 {offsets = [2, 0, 0], sizes = [1, 8, 32], strides = [1, 1, 1]} : vector<4x8x32xbf16> to vector<1x8x32xbf16>
    %112 = vector.shape_cast %111 : vector<1x8x32xbf16> to vector<8x32xbf16>
    %cst_48 = arith.constant dense<0.000000e+00> : vector<8x32xf32>
    %113 = tpu.matmul %110, %112, %cst_48 {dimension_numbers = #tpu.dot_dimension_numbers<[1], [0], [0], [1], [0, 0, 1, 1], [], []>} : vector<8x8xbf16>, vector<8x32xbf16>, vector<8x32xf32> -> vector<8x32xf32>
    %114 = arith.addf %90, %113 : vector<8x32xf32>
    %115 = vector.extract_strided_slice %30 {offsets = [0, 0, 24], sizes = [1, 8, 8], strides = [1, 1, 1]} : vector<1x8x32xbf16> to vector<1x8x8xbf16>
    %116 = vector.extract_strided_slice %32 {offsets = [0, 0, 24], sizes = [1, 8, 8], strides = [1, 1, 1]} : vector<1x8x32xbf16> to vector<1x8x8xbf16>
    "tpu.trace_start"() <{level = 10 : i32, message = "bqd,bkd->bqk"}> : () -> ()
    %cst_49 = arith.constant dense<0.000000e+00> : vector<1x8x8xf32>
    %117 = tpu.matmul %115, %116, %cst_49 {dimension_numbers = #tpu.dot_dimension_numbers<[2], [2], [1], [1], [0, 0, 0, 1, 1, 1], [0], [0]>} : vector<1x8x8xbf16>, vector<1x8x8xbf16>, vector<1x8x8xf32> -> vector<1x8x8xf32>
    "tpu.trace_stop"() : () -> ()
    %118 = vector.broadcast %39 : vector<1x1x8xf32> to vector<1x8x8xf32>
    %119 = arith.addf %117, %118 : vector<1x8x8xf32>
    %cst_50 = arith.constant dense<0xFF800000> : vector<1x8xf32>
    %120 = vector.multi_reduction <maximumf>, %119, %cst_50 [2] : vector<1x8x8xf32> to vector<1x8xf32>
    %121 = vector.shape_cast %120 : vector<1x8xf32> to vector<1x8x1xf32>
    %122 = vector.broadcast %121 : vector<1x8x1xf32> to vector<1x8x8xf32>
    %123 = arith.subf %119, %122 : vector<1x8x8xf32>
    %124 = math.exp %123 : vector<1x8x8xf32>
    %cst_51 = arith.constant dense<0.000000e+00> : vector<1x8xf32>
    %125 = vector.multi_reduction <add>, %124, %cst_51 [2] : vector<1x8x8xf32> to vector<1x8xf32>
    %126 = vector.shape_cast %125 : vector<1x8xf32> to vector<1x8x1xf32>
    %127 = tpu.reciprocal %126 {approx = true} : vector<1x8x1xf32> -> vector<1x8x1xf32>
    %128 = vector.broadcast %127 : vector<1x8x1xf32> to vector<1x8x8xf32>
    %129 = arith.mulf %124, %128 : vector<1x8x8xf32>
    %130 = arith.truncf %129 : vector<1x8x8xf32> to vector<1x8x8xbf16>
    %131 = vector.extract_strided_slice %34 {offsets = [0, 0, 24], sizes = [1, 8, 8], strides = [1, 1, 1]} : vector<1x8x32xbf16> to vector<1x8x8xbf16>
    "tpu.trace_start"() <{level = 10 : i32, message = "bqk,bkd->bqd"}> : () -> ()
    %cst_52 = arith.constant dense<0.000000e+00> : vector<1x8x8xf32>
    %132 = tpu.matmul %130, %131, %cst_52 {dimension_numbers = #tpu.dot_dimension_numbers<[2], [1], [1], [2], [0, 0, 0, 1, 1, 2], [0], [0]>} : vector<1x8x8xbf16>, vector<1x8x8xbf16>, vector<1x8x8xf32> -> vector<1x8x8xf32>
    "tpu.trace_stop"() : () -> ()
    %133 = vector.shape_cast %132 : vector<1x8x8xf32> to vector<8x8xf32>
    %134 = arith.truncf %133 : vector<8x8xf32> to vector<8x8xbf16>
    %135 = vector.extract_strided_slice %41 {offsets = [3, 0, 0], sizes = [1, 8, 32], strides = [1, 1, 1]} : vector<4x8x32xbf16> to vector<1x8x32xbf16>
    %136 = vector.shape_cast %135 : vector<1x8x32xbf16> to vector<8x32xbf16>
    %cst_53 = arith.constant dense<0.000000e+00> : vector<8x32xf32>
    %137 = tpu.matmul %134, %136, %cst_53 {dimension_numbers = #tpu.dot_dimension_numbers<[1], [0], [0], [1], [0, 0, 1, 1], [], []>} : vector<8x8xbf16>, vector<8x32xbf16>, vector<8x32xf32> -> vector<8x32xf32>
    %138 = arith.addf %114, %137 : vector<8x32xf32>
    %c0_54 = arith.constant 0 : index
    %c0_55 = arith.constant 0 : index
    %c0_56 = arith.constant 0 : index
    %139 = vector.load %arg15[%c0_54, %c0_55, %c0_56] : memref<1x1x32xf32, #tpu.memory_space<vmem>>, vector<1x1x32xf32>
    %140 = vector.shape_cast %139 : vector<1x1x32xf32> to vector<1x32xf32>
    %141 = vector.broadcast %140 : vector<1x32xf32> to vector<8x32xf32>
    %142 = arith.addf %138, %141 : vector<8x32xf32>
    %143 = arith.addf %4, %142 : vector<8x32xf32>
    %c0_57 = arith.constant 0 : index
    %c0_58 = arith.constant 0 : index
    %c0_59 = arith.constant 0 : index
    %144 = vector.load %arg20[%c0_57, %c0_58, %c0_59] : memref<1x1x32xf32, #tpu.memory_space<vmem>>, vector<1x1x32xf32>
    %145 = vector.shape_cast %144 : vector<1x1x32xf32> to vector<1x32xf32>
    %c0_60 = arith.constant 0 : index
    %c0_61 = arith.constant 0 : index
    %c0_62 = arith.constant 0 : index
    %146 = vector.load %arg21[%c0_60, %c0_61, %c0_62] : memref<1x1x32xf32, #tpu.memory_space<vmem>>, vector<1x1x32xf32>
    %147 = vector.shape_cast %146 : vector<1x1x32xf32> to vector<1x32xf32>
    %cst_63 = arith.constant dense<0.000000e+00> : vector<8xf32>
    %148 = vector.multi_reduction <add>, %143, %cst_63 [1] : vector<8x32xf32> to vector<8xf32>
    %149 = vector.shape_cast %148 : vector<8xf32> to vector<8x1xf32>
    %cst_64 = arith.constant 3.200000e+01 : f32
    %150 = vector.broadcast %cst_64 : f32 to vector<8x1xf32>
    %151 = arith.divf %149, %150 : vector<8x1xf32>
    %152 = vector.broadcast %151 : vector<8x1xf32> to vector<8x32xf32>
    %153 = arith.subf %143, %152 : vector<8x32xf32>
    %154 = arith.mulf %153, %153 : vector<8x32xf32>
    %cst_65 = arith.constant dense<0.000000e+00> : vector<8xf32>
    %155 = vector.multi_reduction <add>, %154, %cst_65 [1] : vector<8x32xf32> to vector<8xf32>
    %156 = vector.shape_cast %155 : vector<8xf32> to vector<8x1xf32>
    %cst_66 = arith.constant 3.200000e+01 : f32
    %157 = vector.broadcast %cst_66 : f32 to vector<8x1xf32>
    %158 = arith.divf %156, %157 : vector<8x1xf32>
    %cst_67 = arith.constant 9.99999974E-6 : f32
    %159 = vector.broadcast %cst_67 : f32 to vector<8x1xf32>
    %160 = arith.addf %158, %159 : vector<8x1xf32>
    %161 = math.rsqrt %160 : vector<8x1xf32>
    %162 = vector.broadcast %161 : vector<8x1xf32> to vector<8x32xf32>
    %163 = arith.mulf %153, %162 : vector<8x32xf32>
    %164 = vector.broadcast %145 : vector<1x32xf32> to vector<8x32xf32>
    %165 = arith.mulf %163, %164 : vector<8x32xf32>
    %166 = vector.broadcast %147 : vector<1x32xf32> to vector<8x32xf32>
    %167 = arith.addf %165, %166 : vector<8x32xf32>
    %168 = arith.truncf %167 : vector<8x32xf32> to vector<8x32xbf16>
    %c0_68 = arith.constant 0 : index
    %c0_69 = arith.constant 0 : index
    %c0_70 = arith.constant 0 : index
    %169 = vector.load %arg16[%c0_68, %c0_69, %c0_70] : memref<1x32x64xbf16, #tpu.memory_space<vmem>>, vector<1x32x64xbf16>
    %170 = vector.shape_cast %169 : vector<1x32x64xbf16> to vector<32x64xbf16>
    %cst_71 = arith.constant dense<0.000000e+00> : vector<8x64xf32>
    %171 = tpu.matmul %168, %170, %cst_71 {dimension_numbers = #tpu.dot_dimension_numbers<[1], [0], [0], [1], [0, 0, 1, 1], [], []>} : vector<8x32xbf16>, vector<32x64xbf16>, vector<8x64xf32> -> vector<8x64xf32>
    %c0_72 = arith.constant 0 : index
    %c0_73 = arith.constant 0 : index
    %c0_74 = arith.constant 0 : index
    %172 = vector.load %arg17[%c0_72, %c0_73, %c0_74] : memref<1x1x64xf32, #tpu.memory_space<vmem>>, vector<1x1x64xf32>
    %173 = vector.shape_cast %172 : vector<1x1x64xf32> to vector<1x64xf32>
    %174 = vector.broadcast %173 : vector<1x64xf32> to vector<8x64xf32>
    %175 = arith.addf %171, %174 : vector<8x64xf32>
    %cst_75 = arith.constant 5.000000e-01 : f32
    %176 = vector.broadcast %cst_75 : f32 to vector<8x64xf32>
    %177 = arith.mulf %176, %175 : vector<8x64xf32>
    %cst_76 = arith.constant 0.707106769 : f32
    %178 = vector.broadcast %cst_76 : f32 to vector<8x64xf32>
    %179 = arith.mulf %175, %178 : vector<8x64xf32>
    %180 = math.erf %179 : vector<8x64xf32>
    %cst_77 = arith.constant 1.000000e+00 : f32
    %181 = vector.broadcast %cst_77 : f32 to vector<8x64xf32>
    %182 = arith.addf %181, %180 : vector<8x64xf32>
    %183 = arith.mulf %177, %182 : vector<8x64xf32>
    %184 = arith.truncf %183 : vector<8x64xf32> to vector<8x64xbf16>
    %c0_78 = arith.constant 0 : index
    %c0_79 = arith.constant 0 : index
    %c0_80 = arith.constant 0 : index
    %185 = vector.load %arg18[%c0_78, %c0_79, %c0_80] : memref<1x64x32xbf16, #tpu.memory_space<vmem>>, vector<1x64x32xbf16>
    %186 = vector.shape_cast %185 : vector<1x64x32xbf16> to vector<64x32xbf16>
    %cst_81 = arith.constant dense<0.000000e+00> : vector<8x32xf32>
    %187 = tpu.matmul %184, %186, %cst_81 {dimension_numbers = #tpu.dot_dimension_numbers<[1], [0], [0], [1], [0, 0, 1, 1], [], []>} : vector<8x64xbf16>, vector<64x32xbf16>, vector<8x32xf32> -> vector<8x32xf32>
    %c0_82 = arith.constant 0 : index
    %c0_83 = arith.constant 0 : index
    %c0_84 = arith.constant 0 : index
    %188 = vector.load %arg19[%c0_82, %c0_83, %c0_84] : memref<1x1x32xf32, #tpu.memory_space<vmem>>, vector<1x1x32xf32>
    %189 = vector.shape_cast %188 : vector<1x1x32xf32> to vector<1x32xf32>
    %190 = vector.broadcast %189 : vector<1x32xf32> to vector<8x32xf32>
    %191 = arith.addf %187, %190 : vector<8x32xf32>
    %192 = arith.addf %167, %191 : vector<8x32xf32>
    %c0_85 = arith.constant 0 : index
    %c0_86 = arith.constant 0 : index
    %c0_87 = arith.constant 0 : index
    %193 = vector.load %arg22[%c0_85, %c0_86, %c0_87] : memref<1x1x32xf32, #tpu.memory_space<vmem>>, vector<1x1x32xf32>
    %194 = vector.shape_cast %193 : vector<1x1x32xf32> to vector<1x32xf32>
    %c0_88 = arith.constant 0 : index
    %c0_89 = arith.constant 0 : index
    %c0_90 = arith.constant 0 : index
    %195 = vector.load %arg23[%c0_88, %c0_89, %c0_90] : memref<1x1x32xf32, #tpu.memory_space<vmem>>, vector<1x1x32xf32>
    %196 = vector.shape_cast %195 : vector<1x1x32xf32> to vector<1x32xf32>
    %cst_91 = arith.constant dense<0.000000e+00> : vector<8xf32>
    %197 = vector.multi_reduction <add>, %192, %cst_91 [1] : vector<8x32xf32> to vector<8xf32>
    %198 = vector.shape_cast %197 : vector<8xf32> to vector<8x1xf32>
    %cst_92 = arith.constant 3.200000e+01 : f32
    %199 = vector.broadcast %cst_92 : f32 to vector<8x1xf32>
    %200 = arith.divf %198, %199 : vector<8x1xf32>
    %201 = vector.broadcast %200 : vector<8x1xf32> to vector<8x32xf32>
    %202 = arith.subf %192, %201 : vector<8x32xf32>
    %203 = arith.mulf %202, %202 : vector<8x32xf32>
    %cst_93 = arith.constant dense<0.000000e+00> : vector<8xf32>
    %204 = vector.multi_reduction <add>, %203, %cst_93 [1] : vector<8x32xf32> to vector<8xf32>
    %205 = vector.shape_cast %204 : vector<8xf32> to vector<8x1xf32>
    %cst_94 = arith.constant 3.200000e+01 : f32
    %206 = vector.broadcast %cst_94 : f32 to vector<8x1xf32>
    %207 = arith.divf %205, %206 : vector<8x1xf32>
    %cst_95 = arith.constant 9.99999974E-6 : f32
    %208 = vector.broadcast %cst_95 : f32 to vector<8x1xf32>
    %209 = arith.addf %207, %208 : vector<8x1xf32>
    %210 = math.rsqrt %209 : vector<8x1xf32>
    %211 = vector.broadcast %210 : vector<8x1xf32> to vector<8x32xf32>
    %212 = arith.mulf %202, %211 : vector<8x32xf32>
    %213 = vector.broadcast %194 : vector<1x32xf32> to vector<8x32xf32>
    %214 = arith.mulf %212, %213 : vector<8x32xf32>
    %215 = vector.broadcast %196 : vector<1x32xf32> to vector<8x32xf32>
    %216 = arith.addf %214, %215 : vector<8x32xf32>
    %217 = vector.shape_cast %216 : vector<8x32xf32> to vector<1x8x32xf32>
    %c0_96 = arith.constant 0 : index
    %c0_97 = arith.constant 0 : index
    %c0_98 = arith.constant 0 : index
    %218 = vector.load %arg27[%c0_96, %c0_97, %c0_98] : memref<1x8x32xf32, #tpu.memory_space<vmem>>, vector<1x8x32xf32>
    tpu.vector_store %arg27[%c0_96, %c0_97, %c0_98], %217 {strides = array<i32>} : memref<1x8x32xf32, #tpu.memory_space<vmem>>, vector<1x8x32xf32>,
    %c1_i32 = arith.constant 1 : i32
    %219 = arith.cmpi eq, %arg1, %c1_i32 : i32
    %220 = arith.extui %219 : i1 to i32
    %c0_i32_99 = arith.constant 0 : i32
    %221 = arith.cmpi ne, %220, %c0_i32_99 : i32
    scf.if %221 {
      %222 = vector.shape_cast %216 : vector<8x32xf32> to vector<1x8x32xf32>
      %cst_100 = arith.constant 5.000000e-01 : f32
      %223 = vector.broadcast %cst_100 : f32 to vector<1x8x32xf32>
      %224 = arith.mulf %223, %222 : vector<1x8x32xf32>
      %cst_101 = arith.constant 0.707106769 : f32
      %225 = vector.broadcast %cst_101 : f32 to vector<1x8x32xf32>
      %226 = arith.mulf %222, %225 : vector<1x8x32xf32>
      %227 = math.erf %226 : vector<1x8x32xf32>
      %cst_102 = arith.constant 1.000000e+00 : f32
      %228 = vector.broadcast %cst_102 : f32 to vector<1x8x32xf32>
      %229 = arith.addf %228, %227 : vector<1x8x32xf32>
      %230 = arith.mulf %224, %229 : vector<1x8x32xf32>
      %c0_103 = arith.constant 0 : index
      %c0_104 = arith.constant 0 : index
      %c0_105 = arith.constant 0 : index
      %231 = vector.load %arg5[%c0_103, %c0_104, %c0_105] : memref<1x8x32xf32, #tpu.memory_space<vmem>>, vector<1x8x32xf32>
      %232 = arith.mulf %230, %231 : vector<1x8x32xf32>
      %c0_106 = arith.constant 0 : index
      %c0_107 = arith.constant 0 : index
      %c0_108 = arith.constant 0 : index
      %233 = vector.load %arg24[%c0_106, %c0_107, %c0_108] : memref<8x32x128xbf16, #tpu.memory_space<vmem>>, vector<8x32x128xbf16>
      %234 = vector.extract_strided_slice %232 {offsets = [0, 0, 0], sizes = [1, 1, 32], strides = [1, 1, 1]} : vector<1x8x32xf32> to vector<1x1x32xf32>
      %235 = vector.shape_cast %234 : vector<1x1x32xf32> to vector<1x32xf32>
      %236 = arith.truncf %235 : vector<1x32xf32> to vector<1x32xbf16>
      %237 = vector.extract_strided_slice %233 {offsets = [0, 0, 0], sizes = [1, 32, 128], strides = [1, 1, 1]} : vector<8x32x128xbf16> to vector<1x32x128xbf16>
      %238 = vector.shape_cast %237 : vector<1x32x128xbf16> to vector<32x128xbf16>
      %cst_109 = arith.constant dense<0.000000e+00> : vector<1x128xf32>
      %239 = tpu.matmul %236, %238, %cst_109 {dimension_numbers = #tpu.dot_dimension_numbers<[1], [0], [0], [1], [0, 0, 1, 1], [], []>} : vector<1x32xbf16>, vector<32x128xbf16>, vector<1x128xf32> -> vector<1x128xf32>
      %240 = vector.extract_strided_slice %232 {offsets = [0, 1, 0], sizes = [1, 1, 32], strides = [1, 1, 1]} : vector<1x8x32xf32> to vector<1x1x32xf32>
      %241 = vector.shape_cast %240 : vector<1x1x32xf32> to vector<1x32xf32>
      %242 = arith.truncf %241 : vector<1x32xf32> to vector<1x32xbf16>
      %243 = vector.extract_strided_slice %233 {offsets = [1, 0, 0], sizes = [1, 32, 128], strides = [1, 1, 1]} : vector<8x32x128xbf16> to vector<1x32x128xbf16>
      %244 = vector.shape_cast %243 : vector<1x32x128xbf16> to vector<32x128xbf16>
      %cst_110 = arith.constant dense<0.000000e+00> : vector<1x128xf32>
      %245 = tpu.matmul %242, %244, %cst_110 {dimension_numbers = #tpu.dot_dimension_numbers<[1], [0], [0], [1], [0, 0, 1, 1], [], []>} : vector<1x32xbf16>, vector<32x128xbf16>, vector<1x128xf32> -> vector<1x128xf32>
      %246 = vector.extract_strided_slice %232 {offsets = [0, 2, 0], sizes = [1, 1, 32], strides = [1, 1, 1]} : vector<1x8x32xf32> to vector<1x1x32xf32>
      %247 = vector.shape_cast %246 : vector<1x1x32xf32> to vector<1x32xf32>
      %248 = arith.truncf %247 : vector<1x32xf32> to vector<1x32xbf16>
      %249 = vector.extract_strided_slice %233 {offsets = [2, 0, 0], sizes = [1, 32, 128], strides = [1, 1, 1]} : vector<8x32x128xbf16> to vector<1x32x128xbf16>
      %250 = vector.shape_cast %249 : vector<1x32x128xbf16> to vector<32x128xbf16>
      %cst_111 = arith.constant dense<0.000000e+00> : vector<1x128xf32>
      %251 = tpu.matmul %248, %250, %cst_111 {dimension_numbers = #tpu.dot_dimension_numbers<[1], [0], [0], [1], [0, 0, 1, 1], [], []>} : vector<1x32xbf16>, vector<32x128xbf16>, vector<1x128xf32> -> vector<1x128xf32>
      %252 = vector.extract_strided_slice %232 {offsets = [0, 3, 0], sizes = [1, 1, 32], strides = [1, 1, 1]} : vector<1x8x32xf32> to vector<1x1x32xf32>
      %253 = vector.shape_cast %252 : vector<1x1x32xf32> to vector<1x32xf32>
      %254 = arith.truncf %253 : vector<1x32xf32> to vector<1x32xbf16>
      %255 = vector.extract_strided_slice %233 {offsets = [3, 0, 0], sizes = [1, 32, 128], strides = [1, 1, 1]} : vector<8x32x128xbf16> to vector<1x32x128xbf16>
      %256 = vector.shape_cast %255 : vector<1x32x128xbf16> to vector<32x128xbf16>
      %cst_112 = arith.constant dense<0.000000e+00> : vector<1x128xf32>
      %257 = tpu.matmul %254, %256, %cst_112 {dimension_numbers = #tpu.dot_dimension_numbers<[1], [0], [0], [1], [0, 0, 1, 1], [], []>} : vector<1x32xbf16>, vector<32x128xbf16>, vector<1x128xf32> -> vector<1x128xf32>
      %258 = vector.extract_strided_slice %232 {offsets = [0, 4, 0], sizes = [1, 1, 32], strides = [1, 1, 1]} : vector<1x8x32xf32> to vector<1x1x32xf32>
      %259 = vector.shape_cast %258 : vector<1x1x32xf32> to vector<1x32xf32>
      %260 = arith.truncf %259 : vector<1x32xf32> to vector<1x32xbf16>
      %261 = vector.extract_strided_slice %233 {offsets = [4, 0, 0], sizes = [1, 32, 128], strides = [1, 1, 1]} : vector<8x32x128xbf16> to vector<1x32x128xbf16>
      %262 = vector.shape_cast %261 : vector<1x32x128xbf16> to vector<32x128xbf16>
      %cst_113 = arith.constant dense<0.000000e+00> : vector<1x128xf32>
      %263 = tpu.matmul %260, %262, %cst_113 {dimension_numbers = #tpu.dot_dimension_numbers<[1], [0], [0], [1], [0, 0, 1, 1], [], []>} : vector<1x32xbf16>, vector<32x128xbf16>, vector<1x128xf32> -> vector<1x128xf32>
      %264 = vector.extract_strided_slice %232 {offsets = [0, 5, 0], sizes = [1, 1, 32], strides = [1, 1, 1]} : vector<1x8x32xf32> to vector<1x1x32xf32>
      %265 = vector.shape_cast %264 : vector<1x1x32xf32> to vector<1x32xf32>
      %266 = arith.truncf %265 : vector<1x32xf32> to vector<1x32xbf16>
      %267 = vector.extract_strided_slice %233 {offsets = [5, 0, 0], sizes = [1, 32, 128], strides = [1, 1, 1]} : vector<8x32x128xbf16> to vector<1x32x128xbf16>
      %268 = vector.shape_cast %267 : vector<1x32x128xbf16> to vector<32x128xbf16>
      %cst_114 = arith.constant dense<0.000000e+00> : vector<1x128xf32>
      %269 = tpu.matmul %266, %268, %cst_114 {dimension_numbers = #tpu.dot_dimension_numbers<[1], [0], [0], [1], [0, 0, 1, 1], [], []>} : vector<1x32xbf16>, vector<32x128xbf16>, vector<1x128xf32> -> vector<1x128xf32>
      %270 = vector.extract_strided_slice %232 {offsets = [0, 6, 0], sizes = [1, 1, 32], strides = [1, 1, 1]} : vector<1x8x32xf32> to vector<1x1x32xf32>
      %271 = vector.shape_cast %270 : vector<1x1x32xf32> to vector<1x32xf32>
      %272 = arith.truncf %271 : vector<1x32xf32> to vector<1x32xbf16>
      %273 = vector.extract_strided_slice %233 {offsets = [6, 0, 0], sizes = [1, 32, 128], strides = [1, 1, 1]} : vector<8x32x128xbf16> to vector<1x32x128xbf16>
      %274 = vector.shape_cast %273 : vector<1x32x128xbf16> to vector<32x128xbf16>
      %cst_115 = arith.constant dense<0.000000e+00> : vector<1x128xf32>
      %275 = tpu.matmul %272, %274, %cst_115 {dimension_numbers = #tpu.dot_dimension_numbers<[1], [0], [0], [1], [0, 0, 1, 1], [], []>} : vector<1x32xbf16>, vector<32x128xbf16>, vector<1x128xf32> -> vector<1x128xf32>
      %276 = vector.extract_strided_slice %232 {offsets = [0, 7, 0], sizes = [1, 1, 32], strides = [1, 1, 1]} : vector<1x8x32xf32> to vector<1x1x32xf32>
      %277 = vector.shape_cast %276 : vector<1x1x32xf32> to vector<1x32xf32>
      %278 = arith.truncf %277 : vector<1x32xf32> to vector<1x32xbf16>
      %279 = vector.extract_strided_slice %233 {offsets = [7, 0, 0], sizes = [1, 32, 128], strides = [1, 1, 1]} : vector<8x32x128xbf16> to vector<1x32x128xbf16>
      %280 = vector.shape_cast %279 : vector<1x32x128xbf16> to vector<32x128xbf16>
      %cst_116 = arith.constant dense<0.000000e+00> : vector<1x128xf32>
      %281 = tpu.matmul %278, %280, %cst_116 {dimension_numbers = #tpu.dot_dimension_numbers<[1], [0], [0], [1], [0, 0, 1, 1], [], []>} : vector<1x32xbf16>, vector<32x128xbf16>, vector<1x128xf32> -> vector<1x128xf32>
      %282 = arith.addf %239, %245 : vector<1x128xf32>
      %283 = arith.addf %251, %257 : vector<1x128xf32>
      %284 = arith.addf %263, %269 : vector<1x128xf32>
      %285 = arith.addf %275, %281 : vector<1x128xf32>
      %286 = arith.addf %282, %283 : vector<1x128xf32>
      %287 = arith.addf %284, %285 : vector<1x128xf32>
      %288 = arith.addf %286, %287 : vector<1x128xf32>
      %c0_117 = arith.constant 0 : index
      %c0_118 = arith.constant 0 : index
      %289 = vector.load %arg25[%c0_117, %c0_118] : memref<1x128xf32, #tpu.memory_space<vmem>>, vector<1x128xf32>
      %290 = arith.addf %288, %289 : vector<1x128xf32>
      %291 = arith.negf %290 : vector<1x128xf32>
      %292 = math.exp %291 : vector<1x128xf32>
      %cst_119 = arith.constant 1.000000e+00 : f32
      %293 = vector.broadcast %cst_119 : f32 to vector<1x128xf32>
      %294 = arith.addf %293, %292 : vector<1x128xf32>
      %295 = arith.divf %293, %294 : vector<1x128xf32>
      %296 = vector.shape_cast %295 : vector<1x128xf32> to vector<1x1x128xf32>
      %c0_120 = arith.constant 0 : index
      %c0_121 = arith.constant 0 : index
      %c0_122 = arith.constant 0 : index
      %297 = vector.load %arg26[%c0_120, %c0_121, %c0_122] : memref<1x1x128xf32, #tpu.memory_space<vmem>>, vector<1x1x128xf32>
      tpu.vector_store %arg26[%c0_120, %c0_121, %c0_122], %296 {strides = array<i32>} : memref<1x1x128xf32, #tpu.memory_space<vmem>>, vector<1x1x128xf32>,
    } else {
    }
    return
  }
  func.func @transform_0(%arg0: i32, %arg1: i32) -> (i32, i32, i32) {
    %c0_i32 = arith.constant 0 : i32
    %c0_i32_0 = arith.constant 0 : i32
    %c0_i32_1 = arith.constant 0 : i32
    return %arg0, %c0_i32, %c0_i32_0 : i32, i32, i32
  }
  func.func @transform_1(%arg0: i32, %arg1: i32) -> (i32, i32) {
    %c0_i32 = arith.constant 0 : i32
    %c0_i32_0 = arith.constant 0 : i32
    %c0_i32_1 = arith.constant 0 : i32
    return %c0_i32, %c0_i32_0 : i32, i32
  }
  func.func @transform_2(%arg0: i32, %arg1: i32) -> (i32, i32, i32) {
    %c0_i32 = arith.constant 0 : i32
    %c0_i32_0 = arith.constant 0 : i32
    %c0_i32_1 = arith.constant 0 : i32
    return %arg0, %c0_i32, %c0_i32_0 : i32, i32, i32
  }
  func.func @transform_3(%arg0: i32, %arg1: i32) -> (i32, i32, i32) {
    %c0_i32 = arith.constant 0 : i32
    %c0_i32_0 = arith.constant 0 : i32
    %c0_i32_1 = arith.constant 0 : i32
    return %arg0, %c0_i32, %c0_i32_0 : i32, i32, i32
  }
  func.func @transform_4(%arg0: i32, %arg1: i32) -> (i32, i32) {
    %c0_i32 = arith.constant 0 : i32
    %c0_i32_0 = arith.constant 0 : i32
    %c0_i32_1 = arith.constant 0 : i32
    return %c0_i32, %c0_i32_0 : i32, i32
  }
  func.func @transform_5(%arg0: i32, %arg1: i32) -> (i32, i32) {
    %c0_i32 = arith.constant 0 : i32
    %c0_i32_0 = arith.constant 0 : i32
    %c0_i32_1 = arith.constant 0 : i32
    return %c0_i32, %c0_i32_0 : i32, i32
  }
  func.func @transform_6(%arg0: i32, %arg1: i32) -> (i32, i32, i32) {
    %c0_i32 = arith.constant 0 : i32
    %c0_i32_0 = arith.constant 0 : i32
    %c0_i32_1 = arith.constant 0 : i32
    return %arg1, %c0_i32, %c0_i32_0 : i32, i32, i32
  }
  func.func @transform_7(%arg0: i32, %arg1: i32) -> (i32, i32, i32) {
    %c0_i32 = arith.constant 0 : i32
    %c0_i32_0 = arith.constant 0 : i32
    %c0_i32_1 = arith.constant 0 : i32
    return %arg1, %c0_i32, %c0_i32_0 : i32, i32, i32
  }
  func.func @transform_8(%arg0: i32, %arg1: i32) -> (i32, i32, i32) {
    %c0_i32 = arith.constant 0 : i32
    %c0_i32_0 = arith.constant 0 : i32
    %c0_i32_1 = arith.constant 0 : i32
    return %arg1, %c0_i32, %c0_i32_0 : i32, i32, i32
  }
  func.func @transform_9(%arg0: i32, %arg1: i32) -> (i32, i32, i32) {
    %c0_i32 = arith.constant 0 : i32
    %c0_i32_0 = arith.constant 0 : i32
    %c0_i32_1 = arith.constant 0 : i32
    return %arg1, %c0_i32, %c0_i32_0 : i32, i32, i32
  }
  func.func @transform_10(%arg0: i32, %arg1: i32) -> (i32, i32, i32) {
    %c0_i32 = arith.constant 0 : i32
    %c0_i32_0 = arith.constant 0 : i32
    %c0_i32_1 = arith.constant 0 : i32
    return %arg1, %c0_i32, %c0_i32_0 : i32, i32, i32
  }
  func.func @transform_11(%arg0: i32, %arg1: i32) -> (i32, i32, i32) {
    %c0_i32 = arith.constant 0 : i32
    %c0_i32_0 = arith.constant 0 : i32
    %c0_i32_1 = arith.constant 0 : i32
    return %arg1, %c0_i32, %c0_i32_0 : i32, i32, i32
  }
  func.func @transform_12(%arg0: i32, %arg1: i32) -> (i32, i32, i32, i32) {
    %c0_i32 = arith.constant 0 : i32
    %c0_i32_0 = arith.constant 0 : i32
    %c0_i32_1 = arith.constant 0 : i32
    %c0_i32_2 = arith.constant 0 : i32
    return %arg1, %c0_i32, %c0_i32_0, %c0_i32_1 : i32, i32, i32, i32
  }
  func.func @transform_13(%arg0: i32, %arg1: i32) -> (i32, i32, i32) {
    %c0_i32 = arith.constant 0 : i32
    %c0_i32_0 = arith.constant 0 : i32
    %c0_i32_1 = arith.constant 0 : i32
    return %arg1, %c0_i32, %c0_i32_0 : i32, i32, i32
  }
  func.func @transform_14(%arg0: i32, %arg1: i32) -> (i32, i32, i32) {
    %c0_i32 = arith.constant 0 : i32
    %c0_i32_0 = arith.constant 0 : i32
    %c0_i32_1 = arith.constant 0 : i32
    return %arg1, %c0_i32, %c0_i32_0 : i32, i32, i32
  }
  func.func @transform_15(%arg0: i32, %arg1: i32) -> (i32, i32, i32) {
    %c0_i32 = arith.constant 0 : i32
    %c0_i32_0 = arith.constant 0 : i32
    %c0_i32_1 = arith.constant 0 : i32
    return %arg1, %c0_i32, %c0_i32_0 : i32, i32, i32
  }
  func.func @transform_16(%arg0: i32, %arg1: i32) -> (i32, i32, i32) {
    %c0_i32 = arith.constant 0 : i32
    %c0_i32_0 = arith.constant 0 : i32
    %c0_i32_1 = arith.constant 0 : i32
    return %arg1, %c0_i32, %c0_i32_0 : i32, i32, i32
  }
  func.func @transform_17(%arg0: i32, %arg1: i32) -> (i32, i32, i32) {
    %c0_i32 = arith.constant 0 : i32
    %c0_i32_0 = arith.constant 0 : i32
    %c0_i32_1 = arith.constant 0 : i32
    return %arg1, %c0_i32, %c0_i32_0 : i32, i32, i32
  }
  func.func @transform_18(%arg0: i32, %arg1: i32) -> (i32, i32, i32) {
    %c0_i32 = arith.constant 0 : i32
    %c0_i32_0 = arith.constant 0 : i32
    %c0_i32_1 = arith.constant 0 : i32
    return %arg1, %c0_i32, %c0_i32_0 : i32, i32, i32
  }
  func.func @transform_19(%arg0: i32, %arg1: i32) -> (i32, i32, i32) {
    %c0_i32 = arith.constant 0 : i32
    %c0_i32_0 = arith.constant 0 : i32
    %c0_i32_1 = arith.constant 0 : i32
    return %arg1, %c0_i32, %c0_i32_0 : i32, i32, i32
  }
  func.func @transform_20(%arg0: i32, %arg1: i32) -> (i32, i32, i32) {
    %c0_i32 = arith.constant 0 : i32
    %c0_i32_0 = arith.constant 0 : i32
    %c0_i32_1 = arith.constant 0 : i32
    return %arg1, %c0_i32, %c0_i32_0 : i32, i32, i32
  }
  func.func @transform_21(%arg0: i32, %arg1: i32) -> (i32, i32, i32) {
    %c0_i32 = arith.constant 0 : i32
    %c0_i32_0 = arith.constant 0 : i32
    %c0_i32_1 = arith.constant 0 : i32
    return %arg1, %c0_i32, %c0_i32_0 : i32, i32, i32
  }
  func.func @transform_22(%arg0: i32, %arg1: i32) -> (i32, i32, i32) {
    %c0_i32 = arith.constant 0 : i32
    %c0_i32_0 = arith.constant 0 : i32
    %c0_i32_1 = arith.constant 0 : i32
    %c0_i32_2 = arith.constant 0 : i32
    return %c0_i32, %c0_i32_0, %c0_i32_1 : i32, i32, i32
  }
  func.func @transform_23(%arg0: i32, %arg1: i32) -> (i32, i32) {
    %c0_i32 = arith.constant 0 : i32
    %c0_i32_0 = arith.constant 0 : i32
    %c0_i32_1 = arith.constant 0 : i32
    return %c0_i32, %c0_i32_0 : i32, i32
  }
  func.func @transform_24(%arg0: i32, %arg1: i32) -> (i32, i32, i32) {
    %c0_i32 = arith.constant 0 : i32
    %c0_i32_0 = arith.constant 0 : i32
    %c0_i32_1 = arith.constant 0 : i32
    return %arg0, %c0_i32, %c0_i32_0 : i32, i32, i32
  }
}

</mosaic_0001>

<bundles_post_ra>
// kernel: tpu_custom_call.1
= control target key start
LH: loop header
LB: loop body
LE: loop exit
PB: predicated region body
PF: predicated region fallthrough
CT: control target
= control target key end

     0   :  { %s5685_s0 = inlined_call_operand.vmem [shape: f32[2,8,4], index: 0, kind: input, shape index: {}]   ;;  %s5686_s1 = inlined_call_operand.hbm [shape: f32[8,32], index: 1, kind: input, shape index: {}]   ;;  %s5687_s2 = inlined_call_operand.hbm [shape: f32[2,1,8], index: 2, kind: input, shape index: {}]   ;;  %s5688_s3 = inlined_call_operand.hbm [shape: f32[2,8,32], index: 3, kind: input, shape index: {}]   ;;  %s5689_s4 = inlined_call_operand.hbm [shape: bf16[4,32], index: 4, kind: input, shape index: {}]   ;;  %s5690_s5 = inlined_call_operand.hbm [shape: f32[1,32], index: 5, kind: input, shape index: {}]   ;;  %s5691_s6 = inlined_call_operand.vmem [shape: bf16[2,32,32], index: 6, kind: input, shape index: {}]   ;;  %s5692_s7 = inlined_call_operand.hbm [shape: bf16[2,32,32], index: 7, kind: input, shape index: {}]   ;;  %s5693_s8 = inlined_call_operand.hbm [shape: bf16[2,32,32], index: 8, kind: input, shape index: {}]   ;;  %s5694_s9 = inlined_call_operand.hbm [shape: f32[2,1,32], index: 9, kind: input, shape index: {}]   ;;  %s5695_s10 = inlined_call_operand.hbm [shape: f32[2,1,32], index: 10, kind: input, shape index: {}]   ;;  %s5696_s11 = inlined_call_operand.hbm [shape: f32[2,1,32], index: 11, kind: input, shape index: {}]   ;;  %s5697_s12 = inlined_call_operand.hbm [shape: bf16[2,4,8,32], index: 12, kind: input, shape index: {}]   ;;  %s5698_s13 = inlined_call_operand.hbm [shape: f32[2,1,32], index: 13, kind: input, shape index: {}]   ;;  %s5699_s14 = inlined_call_operand.hbm [shape: bf16[2,32,64], index: 14, kind: input, shape index: {}]   ;;  %s5700_s15 = inlined_call_operand.hbm [shape: f32[2,1,64], index: 15, kind: input, shape index: {}]   ;;  %s5701_s16 = inlined_call_operand.vmem [shape: bf16[2,64,32], index: 16, kind: input, shape index: {}]   ;;  %s5702_s17 = inlined_call_operand.hbm [shape: f32[2,1,32], index: 17, kind: input, shape index: {}]   ;;  %s5703_s18 = inlined_call_operand.hbm [shape: f32[2,1,32], index: 18, kind: input, shape index: {}]   ;;  %s5704_s19 = inlined_call_operand.hbm [shape: f32[2,1,32], index: 19, kind: input, shape index: {}]   ;;  %s5705_s20 = inlined_call_operand.hbm [shape: f32[2,1,32], index: 20, kind: input, shape index: {}]   ;;  %s5706_s21 = inlined_call_operand.hbm [shape: f32[2,1,32], index: 21, kind: input, shape index: {}]   ;;  %s5707_s22 = inlined_call_operand.vmem [shape: bf16[8,32,128], index: 22, kind: input, shape index: {}]   ;;  %s5708_s23 = inlined_call_operand.vmem [shape: f32[1,128], index: 23, kind: input, shape index: {}]   ;;  %s5709_s24 = inlined_call_operand.hbm [shape: f32[2,1,128], index: 24, kind: output, shape index: {}]  }
   0x1   :  { %5752 = sst [smem:[#allocation62_spill]] %s5685_s0 }
   0x2   :  { %5753 = sst [smem:[#allocation63_spill]] %s5686_s1 }
   0x3   :  { %5754 = sst [smem:[#allocation64_spill]] %s5687_s2 }
   0x4   :  { %5755 = sst [smem:[#allocation65_spill]] %s5688_s3 }
   0x5   :  { %5756 = sst [smem:[#allocation66_spill]] %s5689_s4 }
   0x6   :  { %5757 = sst [smem:[#allocation67_spill]] %s5690_s5 }
   0x7   :  { %5758 = sst [smem:[#allocation68_spill]] %s5691_s6 }
   0x8   :  { %5759 = sst [smem:[#allocation69_spill]] %s5692_s7 }
   0x9   :  { %5760 = sst [smem:[#allocation70_spill]] %s5693_s8 }
   0xa   :  { %5761 = sst [smem:[#allocation71_spill]] %s5694_s9 }
   0xb   :  { %5762 = sst [smem:[#allocation72_spill]] %s5695_s10 }
   0xc   :  { %5763 = sst [smem:[#allocation73_spill]] %s5696_s11 }
   0xd   :  { %5764 = sst [smem:[#allocation74_spill]] %s5697_s12 }
   0xe   :  { %5765 = sst [smem:[#allocation75_spill]] %s5698_s13 }
   0xf   :  { %5766 = sst [smem:[#allocation76_spill]] %s5699_s14 }
  0x10   :  { %5767 = sst [smem:[#allocation77_spill]] %s5701_s16 }
  0x11   :  { %5768 = sst [smem:[#allocation78_spill]] %s5702_s17 }
  0x12   :  { %5769 = sst [smem:[#allocation79_spill]] %s5704_s19 }
  0x13   :  { %5770 = sst [smem:[#allocation80_spill]] %s5706_s21 }
  0x14   :  { %5771 = sst [smem:[#allocation81_spill]] %s5707_s22 }
  0x15   :  { %5772 = sst [smem:[#allocation82_spill]] %s5708_s23 }
  0x16   :  { %5773 = sst [smem:[#allocation83_spill]] %s5709_s24 }
  0x17   :  { %29 = vsyncpa [#allocation4], 0 }
  0x18   :  { %30 = vsyncpa [#allocation7], 0 }
  0x19   :  { %32 = vsyncpa [#allocation7 + $0x1], 0 }
  0x1a   :  { %33 = vsyncpa [#allocation10], 0 }
  0x1b   :  { %34 = vsyncpa [#allocation13], 0 }
  0x1c   :  { %36 = vsyncpa [#allocation13 + $0x1], 0 }
  0x1d   :  { %37 = vsyncpa [#allocation16], 0 }
  0x1e   :  { %39 = vsyncpa [#allocation16 + $0x1], 0 }
  0x1f   :  { %40 = vsyncpa [#allocation19], 0 }
  0x20   :  { %42 = vsyncpa [#allocation19 + $0x1], 0 }
  0x21   :  { %43 = vsyncpa [#allocation22], 0 }
  0x22   :  { %45 = vsyncpa [#allocation22 + $0x1], 0 }
  0x23   :  { %46 = vsyncpa [#allocation25], 0 }
  0x24   :  { %48 = vsyncpa [#allocation25 + $0x1], 0 }
  0x25   :  { %49 = vsyncpa [#allocation28], 0 }
  0x26   :  { %51 = vsyncpa [#allocation28 + $0x1], 0 }
  0x27   :  { %52 = vsyncpa [#allocation31], 0 }
  0x28   :  { %54 = vsyncpa [#allocation31 + $0x1], 0 }
  0x29   :  { %55 = vsyncpa [#allocation5], 0 }
  0x2a   :  { %57 = vsyncpa [#allocation5 + $0x1], 0  ;;  %s4864_s5 = smov 0   ;;  %s4866_s26 = smov 0  }
  0x2b   :  { %s4868_s27 = smov 0   ;;  %s4870_s28 = smov 0  }
  0x2c   :  { %s4872_s6 = smov 0   ;;  %s4874_s2 = smov 0  }
  0x2d   :  { %s4876_s29 = smov 0   ;;  %s4878_s0 = smov 0  }
  0x2e   :  { %s4880_s7 = smov 0   ;;  %s4882_s30 = smov 0  }
  0x2f   :  { %s4884_s3 = smov 0  }
  0x30 LB: > { %5774 = sst [smem:[#allocation45_spill]] %s4670_s26  ;;  %s4920_s25 = sadd.s32 4294967295, %s4706_s3   ;;  %s4706_s3 = sphi %s4884_s3, %s63_s3   ;;  %s4702_s30 = sphi %s4882_s30, %s5885_s30   ;;  %s4698_s7 = sphi %s4880_s7, %s5884_s7   ;;  %s4694_s0 = sphi %s4878_s0, %s5883_s0   ;;  %s4690_s29 = sphi %s4876_s29, %s5882_s29   ;;  %s4686_s2 = sphi %s4874_s2, %s5881_s2   ;;  %s4682_s6 = sphi %s4872_s6, %s5880_s6   ;;  %s4678_s28 = sphi %s4870_s28, %s5876_s28   ;;  %s4674_s27 = sphi %s4868_s27, %s5875_s27   ;;  %s4670_s26 = sphi %s4866_s26, %s5874_s26   ;;  %s4666_s5 = sphi %s4864_s5, %s5873_s5  }
  0x31   : > { %5775 = sst [smem:[#allocation46_spill]] %s4674_s27  ;;  %s3455_s8 = sadd.s32 4294967294, %s4706_s3  }
  0x32   : > { %5776 = sst [smem:[#allocation47_spill]] %s4678_s28  ;;  %s72_s4 = sadd.s32 1, %s4698_s7 }
  0x33   : > { %5777 = sst [smem:[#allocation48_spill]] %s4682_s6  ;;  %s75_s1 = sadd.s32 1, %s4702_s30 }
  0x34   : > { %5778 = sst [smem:[#allocation49_spill]] %s4690_s29  ;;  %p73_p0 = scmp.ge.s32.totalorder %s72_s4, 2 }
  0x35   : > { %5779 = sst [smem:[#allocation50_spill]] %s4694_s0  ;;  %s129_s24 = sadd.s32 1, %s4686_s2 }
  0x36   : > { %5780 = sst [smem:[#allocation51_spill]] %s4706_s3  ;;  %p5716_p1 = scmp.ne.s32.totalorder %s4686_s2, %s4682_s6 }
  0x37   : > { %5781 = sst [smem:[#allocation52_spill]] %s4920_s25  ;;  %p137_p2 = scmp.eq.s32.totalorder %s4706_s3, 0 }
  0x38   : > { %s5887_s4 = smov (%p73_p0, %s72_s4), 0  ;;  %s5889_s1 = smov (!%p73_p0, %s75_s1), %s4702_s30 }
  0x39   : > { %5782 = sst [smem:[#allocation53_spill]] %s5887_s4  ;;  %p4937_p3 = por %p137_p2, %p5716_p1 }
  0x3a   : > { %p5715_p4 = scmp.ne.s32.totalorder %s4682_s6, %s4678_s28  ;;  %p77_p5 = scmp.ge.s32.totalorder %s5889_s1, 2 }
  0x3b   : > { %s5783_s23 = scalar_select %p4937_p3, 1, 0 }
  0x3c   : > { %p5723_p6 = scmp.eq.s32.totalorder %s4920_s25, 0  ;;  %s246_s22 = ssub.s32 %s4698_s7, %s5887_s4 }
  0x3d   : > { %s249_s16 = sadd.s32 1, %s4674_s27  ;;  %s5891_s1 = smov (%p77_p5, %s5889_s1), 0 }
  0x3e   : > { %5784 = sst [smem:[#allocation54_spill]] %s5891_s1  ;;  %p4954_p7 = por %p5723_p6, %p5715_p4 }
  0x3f   : > { %p247_p8 = scmp.eq.s32.totalorder %s246_s22, 0  ;;  %s126_s0 = ssub.s32 %s4702_s30, %s5891_s1 }
  0x40   : > { %s5785_s29 = scalar_select %p4954_p7, 1, 0 }
  0x41   : > { %p256_p9 = scmp.ne.s32.totalorder %s4674_s27, %s4670_s26  ;;  %p127_p10 = scmp.eq.s32.totalorder %s126_s0, 0 }
  0x42   : > { %5786 = sst [smem:[#allocation55_spill]] %s5785_s29  ;;  %p262_p11 = scmp.ne.s32.totalorder %s4670_s26, %s4666_s5 }
  0x43   : > { %s4965_s4 = scalar_select %p247_p8, %s4674_s27, %s249_s16  }
  0x44   : > { %s4968_s21 = scalar_select %p127_p10, %s4686_s2, %s129_s24  }
  0x45   : > { %5787 = sst [smem:[#allocation56_spill]] %s4965_s4  ;;  %p4972_p12 = por %p256_p9, %p137_p2 }
  0x46   : > { %5788 = sst [smem:[#allocation57_spill]] %s4968_s21  ;;  %p4978_p13 = por %p262_p11, %p5723_p6 }
  0x47   : > { %p692_p0 = scmp.eq.s32.totalorder %s4920_s25, 3  ;;  %p698_p5 = scmp.eq.s32.totalorder %s3455_s8, 3 }
  0x48   : > { %s5790_s17 = scalar_select %p4978_p13, 1, 0 }
  0x49   : > { %p3456_p4 = scmp.ge.s32.totalorder %s4706_s3, 1  ;;  %p705_p1 = scmp.lt.s32.totalorder %s4706_s3, 5 }
  0x4a   : > { %5791 = sst [smem:[#allocation58_spill]] %s5790_s17  ;;  %p5792_p7 = scmp.ne.s32.totalorder %s4686_s2, %s4682_s6 }
  0x4b   : > { %p5795_p8 = scmp.ne.s32.totalorder %s4682_s6, %s4678_s28  ;;  %p4999_p2 = pnand %p3456_p4, %p705_p1 }
  0x4c   : > { %p4988_p3 = por %p692_p0, %p5792_p7  ;;  %s4708_s5 = smov [#allocation9]  }
  0x4d   : > { %p4995_p10 = por %p698_p5, %p5795_p8  ;;  %p3877_p9 = pneg %p4999_p2 }
  0x4e   : > { %s5793_s16 = scalar_select %p4988_p3, 1, 0 }
  0x4f   : > { %s5796_s22 = scalar_select %p4995_p10, 1, 0 }
  0x50   : > { %5794 = sst [smem:[#allocation59_spill]] %s5793_s16  ;;  %s729_s0 = sshll.u32 %s4708_s5, 4  ;;  %s730_s0 = int_to_ptr.vmem [resolvable:$true] %s729_s0 }
  0x51   : > { %5797 = sst [smem:[#allocation60_spill]] %s5796_s22  ;;  %p5007_p7 = pnand %p3877_p9, %p5723_p6 }
  0x52   : > { %s5798_s24 = scalar_select %p4999_p2, 1, 0 }
  0x53   : > { %s4709_s1 = smov [#allocation3]   ;;  %p4058_p1 = pneg %p5007_p7 }
  0x54   : > { %5799 = sst [smem:[#allocation61_spill]] %s5798_s24  ;;  %s718_s21 = sshll.u32 %s4709_s1, 4  ;;  %s719_s21 = int_to_ptr.vmem [resolvable:$true] %s718_s21 }
  0x55   : > { %s4067_s4 = scalar_lea.vmem %s730_s0, 32  ;;  %p4075_p5 = scmp.lt.s32.totalorder %s730_s0, %s730_s0 }
  0x56   : > { %p4068_p4 = scmp.ne.s32.totalorder %s730_s0, %s4067_s4  ;;  %p4076_p8 = scmp.lt.s32.totalorder %s4067_s4, %s4067_s4 }
  0x58   : > { %p4070_p11 = pnand %p4068_p4, %p4058_p1  ;;  %p4077_p10 = por %p4076_p8, %p4075_p5 }
  0x5a   : > { %p4071_p0 = pneg %p4070_p11 }
  0x5c   : > { %p4078_p3 = pnand %p4077_p10, %p4071_p0 }
  0x5e   : > { %4081 = shalt.err (!%p4078_p3)
}
  0x5f   : > { %s5801_s28 = sld [smem:[#allocation66_spill]]  ;;  %s4093_s1 = scalar_lea.vmem %s719_s21, 128 }
  0x60   : > { %p4094_p9 = scmp.ne.s32.totalorder %s719_s21, %s4093_s1  ;;  %p4101_p11 = scmp.lt.s32.totalorder %s719_s21, %s719_s21 }
  0x61   : > { %p4102_p13 = scmp.lt.s32.totalorder %s4093_s1, %s4093_s1 }
  0x62   : > { %p4096_p6 = pnand %p4094_p9, %p4058_p1 }
  0x63   : > { %p4103_p2 = por %p4102_p13, %p4101_p11 }
  0x64   : > { %p4097_p4 = pneg %p4096_p6 }
  0x65   : > { %3883 = dma.hbm_to_vmem [thread:$0]  (!%p5007_p7), %s5801_s28, 32, %s730_s0, [#allocation10]  }
  0x66   : > { %p4104_p5 = pnand %p4103_p2, %p4097_p4 }
  0x68   : > { %4107 = shalt.err (!%p4104_p5)
}
  0x69   : > { %s5802_s17 = sld [smem:[#allocation63_spill]]  ;;  %s4710_s28 = smov [#allocation11]  }
  0x6a   : > { %s740_s22 = sshll.u32 %s4710_s28, 4  ;;  %s741_s22 = int_to_ptr.vmem [resolvable:$true] %s740_s22 }
  0x6b   : > { %s4119_s0 = scalar_lea.vmem %s741_s22, 16  ;;  %s4126_s5 = scalar_lea.vmem %s741_s22, 32 }
  0x6c   : > { %p4120_p3 = scmp.ne.s32.totalorder %s741_s22, %s4119_s0  ;;  %p4127_p13 = scmp.lt.s32.totalorder %s741_s22, %s741_s22 }
  0x6d   : > { %p4128_p2 = scmp.lt.s32.totalorder %s4126_s5, %s4119_s0 }
  0x6e   : > { %p4122_p6 = pnand %p4120_p3, %p4058_p1 }
  0x6f   : > { %3880 = dma.hbm_to_vmem [thread:$0]  (!%p5007_p7), %s5802_s17, 128, %s719_s21, [#allocation4]  }
  0x70   : > { %p4123_p10 = pneg %p4122_p6  ;;  %p4129_p0 = por %p4128_p2, %p4127_p13 }
  0x72   : > { %p4130_p8 = pnand %p4129_p0, %p4123_p10 }
  0x74   : > { %4133 = shalt.err (!%p4130_p8)
}
  0x75   : > { %s5803_s17 = sld [smem:[#allocation67_spill]]  ;;  %p3460_p9 = scmp.ge.s32.totalorder %s4706_s3, 4 }
  0x76   : > { %s5039_s21 = sand.u32 (!%p3460_p9), 1, %s4706_s3   ;;  %s5736_s4 = sand.u32 (!%p3460_p9), 1, %s4686_s2  }
  0x77   : > { %753 = sbr.rel (%p3460_p9) target bundleno = 344 (0x158), region = 36  ;;  %s3461_s28 = sshll.u32 (!%p3460_p9), %s4702_s30, 4 }
  0x78   : > { %s767_s0 = scalar_lea.vmem (!%p3460_p9), [#allocation6], %s5736_s4  ;;  %s5804_s16 = sld [smem:[#allocation64_spill]] (!%p3460_p9) }
  0x79   : > { %s774_s8 = sshll.u32 (!%p3460_p9), %s767_s0, 4  ;;  %s5739_s1 = scalar_lea.sflag (!%p3460_p9), [#allocation7], %s5039_s21  ;;  %s775_s8 = int_to_ptr.vmem [resolvable:$true] %s774_s8 }
  0x7a   : > { %p5805_p1 = scmp.ne.s32.totalorder (!%p3460_p9), %s5783_s23, 0  ;;  %s4711_s29 = smov (!%p3460_p9), [#allocation6]  }
  0x7b   : > { %3886 = dma.hbm_to_vmem [thread:$0]  (!%p5007_p7), %s5803_s17, 16, %s741_s22, [#allocation10]  }
  0x7c   : > { %s4146_s17 = scalar_lea.vmem %s775_s8, 16  ;;  %s4150_s3 = sshll.u32 %s4711_s29, 4  ;;  %s4151_s3 = int_to_ptr.vmem [resolvable:$false] %s4150_s3 }
  0x7d   : > { %p4147_p7 = scmp.ne.s32.totalorder %s775_s8, %s4146_s17  ;;  %s4152_s6 = scalar_lea.vmem %s4151_s3, 32 }
  0x7e   : > { %s772_s22 = scalar_lea.hbm %s5804_s16, %s3461_s28  ;;  %p4153_p5 = scmp.lt.s32.totalorder %s775_s8, %s4151_s3 }
  0x7f   : > { %p4148_p4 = pnand %p4147_p7, %p5805_p1  ;;  %p4154_p3 = scmp.lt.s32.totalorder %s4152_s6, %s4146_s17 }
  0x81   : > { %p4149_p11 = pneg %p4148_p4  ;;  %p4155_p6 = por %p4154_p3, %p4153_p5 }
  0x83   : > { %p4156_p10 = pnand %p4155_p6, %p4149_p11 }
  0x85   : > { %4159 = shalt.err (!%p4156_p10)
}
  0x86   : > { %3837 = dma.hbm_to_vmem [thread:$0]  (%p5805_p1), %s772_s22, 16, %s775_s8, %s5739_s1  }
  0x87   : > { %s5056_s26 = sand.u32 1, %s4674_s27   ;;  %s5062_s3 = sshll.u32 %s4698_s7, 8 }
  0x88   : > { %s5059_s29 = sshll.u32 %s5056_s26, 4  ;;  %s5806_s0 = sld [smem:[#allocation69_spill]] }
  0x89   : > { %s811_s16 = scalar_lea.vmem [#allocation12], %s5059_s29  ;;  %s5742_s4 = scalar_lea.sflag [#allocation13], %s5039_s21 }
  0x8a   : > { %s818_s17 = sshll.u32 %s811_s16, 4  ;;  %s4712_s8 = smov [#allocation12]   ;;  %s819_s17 = int_to_ptr.vmem [resolvable:$true] %s818_s17 }
  0x8b   : > { %s4172_s25 = scalar_lea.vmem %s819_s17, 256  ;;  %s4176_s22 = sshll.u32 %s4712_s8, 4  ;;  %s4177_s22 = int_to_ptr.vmem [resolvable:$false] %s4176_s22 }
  0x8c   : > { %p4173_p13 = scmp.ne.s32.totalorder %s819_s17, %s4172_s25  ;;  %s4178_s1 = scalar_lea.vmem %s4177_s22, 512 }
  0x8d   : > { %p4179_p8 = scmp.lt.s32.totalorder %s819_s17, %s4177_s22  ;;  %p4180_p9 = scmp.lt.s32.totalorder %s4178_s1, %s4172_s25 }
  0x8e   : > { %s817_s5 = scalar_lea.hbm %s5806_s0, %s5062_s3  ;;  %p4174_p2 = pnand %p4173_p13, %p4972_p12 }
  0x8f   : > { %p4181_p7 = por %p4180_p9, %p4179_p8 }
  0x90   : > { %p4175_p0 = pneg %p4174_p2 }
  0x92   : > { %p4182_p4 = pnand %p4181_p7, %p4175_p0 }
  0x94   : > { %4185 = shalt.err (!%p4182_p4)
}
  0x95   : > { %s5743_s6 = smov 64   ;;  %s5749_s28 = smov 4  }
  0x96   : > { %3839 = dma.hbm_to_vmem [thread:$0]  (%p4972_p12), %s817_s5, 256, %s819_s17, %s5742_s4, %s5743_s6, %s5743_s6, %s5749_s28  }
  0x97   : > { %s5080_s0 = sshll.u32 %s4698_s7, 4  ;;  %s852_s25 = scalar_lea.vmem [#allocation15], %s5056_s26 }
  0x98   : > { %s859_s1 = sshll.u32 %s852_s25, 4  ;;  %s5807_s9 = sld [smem:[#allocation71_spill]]  ;;  %s860_s1 = int_to_ptr.vmem [resolvable:$true] %s859_s1 }
  0x99   : > { %s5745_s27 = scalar_lea.sflag [#allocation16], %s5039_s21  ;;  %s4198_s24 = scalar_lea.vmem %s860_s1, 16 }
  0x9a   : > { %p4199_p11 = scmp.ne.s32.totalorder %s860_s1, %s4198_s24  ;;  %s4715_s14 = smov [#allocation15]  }
  0x9b   : > { %s4202_s12 = sshll.u32 %s4715_s14, 4  ;;  %s4203_s12 = int_to_ptr.vmem [resolvable:$false] %s4202_s12 }
  0x9c   : > { %p4200_p5 = pnand %p4199_p11, %p4972_p12  ;;  %s4204_s5 = scalar_lea.vmem %s4203_s12, 32 }
  0x9d   : > { %p4205_p6 = scmp.lt.s32.totalorder %s860_s1, %s4203_s12  ;;  %p4206_p10 = scmp.lt.s32.totalorder %s4204_s5, %s4198_s24 }
  0x9e   : > { %s857_s22 = scalar_lea.hbm %s5807_s9, %s5080_s0  ;;  %p4201_p3 = pneg %p4200_p5 }
  0x9f   : > { %p4207_p13 = por %p4206_p10, %p4205_p6 }
  0xa1   : > { %p4208_p2 = pnand %p4207_p13, %p4201_p3 }
  0xa3   : > { %4211 = shalt.err (!%p4208_p2)
}
  0xa4   : > { %3841 = dma.hbm_to_vmem [thread:$0]  (%p4972_p12), %s857_s22, 16, %s860_s1, %s5745_s27  }
  0xa5   : > { %s5808_s11 = sld [smem:[#allocation73_spill]]  ;;  %s886_s16 = scalar_lea.vmem [#allocation18], %s5056_s26 }
  0xa6   : > { %s893_s8 = sshll.u32 %s886_s16, 4  ;;  %s5746_s12 = scalar_lea.sflag [#allocation19], %s5039_s21  ;;  %s894_s8 = int_to_ptr.vmem [resolvable:$true] %s893_s8 }
  0xa7   : > { %s4224_s24 = scalar_lea.vmem %s894_s8, 16  ;;  %s4716_s5 = smov [#allocation18]  }
  0xa8   : > { %p4225_p0 = scmp.ne.s32.totalorder %s894_s8, %s4224_s24  ;;  %s4228_s4 = sshll.u32 %s4716_s5, 4  ;;  %s4229_s4 = int_to_ptr.vmem [resolvable:$false] %s4228_s4 }
  0xa9   : > { %s4230_s6 = scalar_lea.vmem %s4229_s4, 32  ;;  %p4231_p7 = scmp.lt.s32.totalorder %s894_s8, %s4229_s4 }
  0xaa   : > { %p4226_p8 = pnand %p4225_p0, %p4972_p12  ;;  %p4232_p4 = scmp.lt.s32.totalorder %s4230_s6, %s4224_s24 }
  0xab   : > { %s891_s14 = scalar_lea.hbm %s5808_s11, %s5080_s0 }
  0xac   : > { %p4227_p9 = pneg %p4226_p8  ;;  %p4233_p11 = por %p4232_p4, %p4231_p7 }
  0xae   : > { %p4234_p5 = pnand %p4233_p11, %p4227_p9 }
  0xb0   : > { %4237 = shalt.err (!%p4234_p5)
}
  0xb1   : > { %3843 = dma.hbm_to_vmem [thread:$0]  (%p4972_p12), %s891_s14, 16, %s894_s8, %s5746_s12  }
  0xb2   : > { %s5809_s13 = sld [smem:[#allocation75_spill]]  ;;  %s924_s25 = scalar_lea.vmem [#allocation21], %s5056_s26 }
  0xb3   : > { %s931_s16 = sshll.u32 %s924_s25, 4  ;;  %s5747_s4 = scalar_lea.sflag [#allocation22], %s5039_s21  ;;  %s932_s16 = int_to_ptr.vmem [resolvable:$true] %s931_s16 }
  0xb4   : > { %s4250_s6 = scalar_lea.vmem %s932_s16, 16  ;;  %s4717_s24 = smov [#allocation21]  }
  0xb5   : > { %p4251_p3 = scmp.ne.s32.totalorder %s932_s16, %s4250_s6  ;;  %s4254_s5 = sshll.u32 %s4717_s24, 4  ;;  %s4255_s5 = int_to_ptr.vmem [resolvable:$false] %s4254_s5 }
  0xb6   : > { %s4256_s27 = scalar_lea.vmem %s4255_s5, 32  ;;  %p4257_p13 = scmp.lt.s32.totalorder %s932_s16, %s4255_s5 }
  0xb7   : > { %p4252_p6 = pnand %p4251_p3, %p4972_p12  ;;  %p4258_p2 = scmp.lt.s32.totalorder %s4256_s27, %s4250_s6 }
  0xb8   : > { %s929_s17 = scalar_lea.hbm %s5809_s13, %s5080_s0 }
  0xb9   : > { %p4253_p10 = pneg %p4252_p6  ;;  %p4259_p0 = por %p4258_p2, %p4257_p13 }
  0xbb   : > { %p4260_p8 = pnand %p4259_p0, %p4253_p10 }
  0xbd   : > { %4263 = shalt.err (!%p4260_p8)
}
  0xbe   : > { %3845 = dma.hbm_to_vmem [thread:$0]  (%p4972_p12), %s929_s17, 16, %s932_s16, %s5747_s4  }
  0xbf   : > { %s967_s1 = scalar_lea.hbm %s5700_s15, %s5080_s0  ;;  %s962_s22 = scalar_lea.vmem [#allocation24], %s5056_s26 }
  0xc0   : > { %s969_s25 = sshll.u32 %s962_s22, 4  ;;  %s5748_s27 = scalar_lea.sflag [#allocation25], %s5039_s21  ;;  %s970_s25 = int_to_ptr.vmem [resolvable:$true] %s969_s25 }
  0xc1   : > { %s4276_s6 = scalar_lea.vmem %s970_s25, 16  ;;  %s4718_s24 = smov [#allocation24]  }
  0xc2   : > { %p4277_p9 = scmp.ne.s32.totalorder %s970_s25, %s4276_s6  ;;  %s4280_s5 = sshll.u32 %s4718_s24, 4  ;;  %s4281_s5 = int_to_ptr.vmem [resolvable:$false] %s4280_s5 }
  0xc3   : > { %s4282_s12 = scalar_lea.vmem %s4281_s5, 32  ;;  %p4283_p11 = scmp.lt.s32.totalorder %s970_s25, %s4281_s5 }
  0xc4   : > { %p4278_p7 = pnand %p4277_p9, %p4972_p12  ;;  %p4284_p5 = scmp.lt.s32.totalorder %s4282_s12, %s4276_s6 }
  0xc6   : > { %p4279_p4 = pneg %p4278_p7  ;;  %p4285_p3 = por %p4284_p5, %p4283_p11 }
  0xc8   : > { %p4286_p6 = pnand %p4285_p3, %p4279_p4 }
  0xca   : > { %4289 = shalt.err (!%p4286_p6)
}
  0xcb   : > { %3847 = dma.hbm_to_vmem [thread:$0]  (%p4972_p12), %s967_s1, 16, %s970_s25, %s5748_s27  }
  0xcc   : > { %s1009_s14 = scalar_lea.hbm %s5703_s18, %s5080_s0  ;;  %s1004_s8 = scalar_lea.vmem [#allocation27], %s5056_s26 }
  0xcd   : > { %s1011_s22 = sshll.u32 %s1004_s8, 4  ;;  %s5751_s12 = scalar_lea.sflag [#allocation28], %s5039_s21  ;;  %s1012_s22 = int_to_ptr.vmem [resolvable:$true] %s1011_s22 }
  0xce   : > { %s4302_s6 = scalar_lea.vmem %s1012_s22, 16  ;;  %s4719_s24 = smov [#allocation27]  }
  0xcf   : > { %p4303_p10 = scmp.ne.s32.totalorder %s1012_s22, %s4302_s6  ;;  %s4306_s5 = sshll.u32 %s4719_s24, 4  ;;  %s4307_s5 = int_to_ptr.vmem [resolvable:$false] %s4306_s5 }
  0xd0   : > { %s4308_s4 = scalar_lea.vmem %s4307_s5, 32  ;;  %p4309_p0 = scmp.lt.s32.totalorder %s1012_s22, %s4307_s5 }
  0xd1   : > { %p4304_p13 = pnand %p4303_p10, %p4972_p12  ;;  %p4310_p8 = scmp.lt.s32.totalorder %s4308_s4, %s4302_s6 }
  0xd3   : > { %p4305_p2 = pneg %p4304_p13  ;;  %p4311_p9 = por %p4310_p8, %p4309_p0 }
  0xd5   : > { %p4312_p7 = pnand %p4311_p9, %p4305_p2 }
  0xd7   : > { %4315 = shalt.err (!%p4312_p7)
}
  0xd8   : > { %3849 = dma.hbm_to_vmem [thread:$0]  (%p4972_p12), %s1009_s14, 16, %s1012_s22, %s5751_s12  }
  0xd9   : > { %s1043_s17 = scalar_lea.hbm %s5705_s20, %s5080_s0  ;;  %s1038_s16 = scalar_lea.vmem [#allocation30], %s5056_s26 }
  0xda   : > { %s1045_s8 = sshll.u32 %s1038_s16, 4  ;;  %s5810_s4 = sand.u32 1, %s4686_s2   ;;  %s1046_s8 = int_to_ptr.vmem [resolvable:$true] %s1045_s8 }
  0xdb   : > { %s3462_s6 = sshll.u32 %s5810_s4, 3  ;;  %s1036_s24 = scalar_lea.sflag [#allocation31], %s5039_s21 }
  0xdc   : > { %s4328_s5 = scalar_lea.vmem %s1046_s8, 16  ;;  %s4720_s27 = smov [#allocation30]  }
  0xdd   : > { %p4329_p4 = scmp.ne.s32.totalorder %s1046_s8, %s4328_s5  ;;  %s4332_s28 = sshll.u32 %s4720_s27, 4  ;;  %s4333_s28 = int_to_ptr.vmem [resolvable:$false] %s4332_s28 }
  0xde   : > { %s4334_s9 = scalar_lea.vmem %s4333_s28, 32  ;;  %p4335_p3 = scmp.lt.s32.totalorder %s1046_s8, %s4333_s28 }
  0xdf   : > { %p4330_p11 = pnand %p4329_p4, %p4972_p12  ;;  %p4336_p6 = scmp.lt.s32.totalorder %s4334_s9, %s4328_s5 }
  0xe1   : > { %p4331_p5 = pneg %p4330_p11  ;;  %p4337_p10 = por %p4336_p6, %p4335_p3 }
  0xe3   : > { %p4338_p13 = pnand %p4337_p10, %p4331_p5 }
  0xe5   : > { %4341 = shalt.err (!%p4338_p13)
}
  0xe6   : > { %3851 = dma.hbm_to_vmem [thread:$0]  (%p4972_p12), %s1043_s17, 16, %s1046_s8, %s1036_s24  }
  0xe7   : > { %s3463_s14 = sshll.u32 %s4702_s30, 7  ;;  %s5811_s25 = sld [smem:[#allocation65_spill]] }
  0xe8   : > { %s785_s27 = scalar_lea.vmem [#allocation8], %s3462_s6  ;;  %s4721_s9 = smov [#allocation8]  }
  0xe9   : > { %s792_s4 = sshll.u32 %s785_s27, 4  ;;  %s4358_s5 = sshll.u32 %s4721_s9, 4  ;;  %s793_s4 = int_to_ptr.vmem [resolvable:$true] %s792_s4  ;;  %s4359_s5 = int_to_ptr.vmem [resolvable:$false] %s4358_s5 }
  0xea   : > { %s4354_s28 = scalar_lea.vmem %s793_s4, 128  ;;  %s4360_s12 = scalar_lea.vmem %s4359_s5, 256 }
  0xeb   : > { %p4355_p2 = scmp.ne.s32.totalorder %s793_s4, %s4354_s28  ;;  %p4361_p9 = scmp.lt.s32.totalorder %s793_s4, %s4359_s5 }
  0xec   : > { %p4362_p7 = scmp.lt.s32.totalorder %s4360_s12, %s4354_s28 }
  0xed   : > { %s790_s16 = scalar_lea.hbm %s5811_s25, %s3463_s14  ;;  %p4356_p0 = pnand %p4355_p2, %p5805_p1 }
  0xee   : > { %p4363_p4 = por %p4362_p7, %p4361_p9 }
  0xef   : > { %p4357_p8 = pneg %p4356_p0 }
  0xf1   : > { %p4364_p11 = pnand %p4363_p4, %p4357_p8 }
  0xf3   : > { %4367 = shalt.err (!%p4364_p11)
}
  0xf4   : > { %s5812_s17 = scalar_lea.sflag [#allocation7], %s5039_s21  ;;  %s5813_s14 = sld [smem:[#allocation70_spill]] }
  0xf5   : > { %3838 = dma.hbm_to_vmem [thread:$0]  (%p5805_p1), %s790_s16, 128, %s793_s4, %s5812_s17  }
  0xf6   : > { %s832_s1 = scalar_lea.vmem [#allocation14], %s5059_s29  ;;  %s4722_s12 = smov [#allocation14]  }
  0xf7   : > { %s839_s25 = sshll.u32 %s832_s1, 4  ;;  %s4384_s23 = sshll.u32 %s4722_s12, 4  ;;  %s840_s25 = int_to_ptr.vmem [resolvable:$true] %s839_s25  ;;  %s4385_s23 = int_to_ptr.vmem [resolvable:$false] %s4384_s23 }
  0xf8   : > { %s4380_s27 = scalar_lea.vmem %s840_s25, 256  ;;  %s4386_s28 = scalar_lea.vmem %s4385_s23, 512 }
  0xf9   : > { %p4381_p5 = scmp.ne.s32.totalorder %s840_s25, %s4380_s27  ;;  %p4387_p10 = scmp.lt.s32.totalorder %s840_s25, %s4385_s23 }
  0xfa   : > { %s838_s22 = scalar_lea.hbm %s5813_s14, %s5062_s3  ;;  %p4388_p13 = scmp.lt.s32.totalorder %s4386_s28, %s4380_s27 }
  0xfb   : > { %p4382_p3 = pnand %p4381_p5, %p4972_p12 }
  0xfc   : > { %p4389_p2 = por %p4388_p13, %p4387_p10 }
  0xfd   : > { %p4383_p6 = pneg %p4382_p3 }
  0xff   : > { %p4390_p1 = pnand %p4389_p2, %p4383_p6 }
 0x101   : > { %4393 = shalt.err (!%p4390_p1)
}
 0x102   : > { %s5814_s16 = smov 4   ;;  %s5815_s4 = smov 64  }
 0x103   : > { %s5816_s9 = scalar_lea.sflag [#allocation13], %s5039_s21  ;;  %s5817_s10 = sld [smem:[#allocation72_spill]] }
 0x104   : > { %3840 = dma.hbm_to_vmem [thread:$0]  (%p4972_p12), %s838_s22, 256, %s840_s25, %s5816_s9, %s5815_s4, %s5815_s4, %s5814_s16  }
 0x105   : > { %s869_s6 = scalar_lea.vmem [#allocation17], %s5056_s26  ;;  %s4723_s27 = smov [#allocation17]  }
 0x106   : > { %s876_s14 = sshll.u32 %s869_s6, 4  ;;  %s4410_s12 = sshll.u32 %s4723_s27, 4  ;;  %s877_s14 = int_to_ptr.vmem [resolvable:$true] %s876_s14  ;;  %s4411_s12 = int_to_ptr.vmem [resolvable:$false] %s4410_s12 }
 0x107   : > { %s4406_s1 = scalar_lea.vmem %s877_s14, 16  ;;  %s4412_s23 = scalar_lea.vmem %s4411_s12, 32 }
 0x108   : > { %p4407_p0 = scmp.ne.s32.totalorder %s877_s14, %s4406_s1  ;;  %p4413_p7 = scmp.lt.s32.totalorder %s877_s14, %s4411_s12 }
 0x109   : > { %s874_s8 = scalar_lea.hbm %s5817_s10, %s5080_s0  ;;  %p4414_p4 = scmp.lt.s32.totalorder %s4412_s23, %s4406_s1 }
 0x10a   : > { %p4408_p8 = pnand %p4407_p0, %p4972_p12 }
 0x10b   : > { %p4415_p11 = por %p4414_p4, %p4413_p7 }
 0x10c   : > { %p4409_p9 = pneg %p4408_p8 }
 0x10e   : > { %p4416_p5 = pnand %p4415_p11, %p4409_p9 }
 0x110   : > { %4419 = shalt.err (!%p4416_p5)
}
 0x111   : > { %s5818_s22 = scalar_lea.sflag [#allocation16], %s5039_s21  ;;  %s5819_s9 = sld [smem:[#allocation74_spill]] }
 0x112   : > { %3842 = dma.hbm_to_vmem [thread:$0]  (%p4972_p12), %s874_s8, 16, %s877_s14, %s5818_s22  }
 0x113   : > { %s904_s17 = scalar_lea.vmem [#allocation20], %s5059_s29  ;;  %s4724_s1 = smov [#allocation20]  }
 0x114   : > { %s911_s6 = sshll.u32 %s904_s17, 4  ;;  %s4436_s12 = sshll.u32 %s4724_s1, 4  ;;  %s912_s6 = int_to_ptr.vmem [resolvable:$true] %s911_s6  ;;  %s4437_s12 = int_to_ptr.vmem [resolvable:$false] %s4436_s12 }
 0x115   : > { %s4432_s27 = scalar_lea.vmem %s912_s6, 256  ;;  %s4438_s23 = scalar_lea.vmem %s4437_s12, 512 }
 0x116   : > { %p4433_p3 = scmp.ne.s32.totalorder %s912_s6, %s4432_s27  ;;  %p4439_p13 = scmp.lt.s32.totalorder %s912_s6, %s4437_s12 }
 0x117   : > { %s910_s5 = scalar_lea.hbm %s5819_s9, %s5062_s3  ;;  %p4440_p2 = scmp.lt.s32.totalorder %s4438_s23, %s4432_s27 }
 0x118   : > { %p4434_p6 = pnand %p4433_p3, %p4972_p12 }
 0x119   : > { %p4441_p1 = por %p4440_p2, %p4439_p13 }
 0x11a   : > { %p4435_p10 = pneg %p4434_p6 }
 0x11c   : > { %p4442_p0 = pnand %p4441_p1, %p4435_p10 }
 0x11e   : > { %4445 = shalt.err (!%p4442_p0)
}
 0x11f   : > { %s5820_s8 = scalar_lea.sflag [#allocation19], %s5039_s21  ;;  %s5821_s25 = sld [smem:[#allocation76_spill]] }
 0x120   : > { %3844 = dma.hbm_to_vmem [thread:$0]  (%p4972_p12), %s910_s5, 256, %s912_s6, %s5820_s8, %s5815_s4, %s5815_s4, %s5814_s16  }
 0x121   : > { %s942_s9 = scalar_lea.vmem [#allocation23], %s5059_s29  ;;  %s4725_s1 = smov [#allocation23]  }
 0x122   : > { %s949_s17 = sshll.u32 %s942_s9, 4  ;;  %s4462_s12 = sshll.u32 %s4725_s1, 4  ;;  %s950_s17 = int_to_ptr.vmem [resolvable:$true] %s949_s17  ;;  %s4463_s12 = int_to_ptr.vmem [resolvable:$false] %s4462_s12 }
 0x123   : > { %s4458_s27 = scalar_lea.vmem %s950_s17, 256  ;;  %s4464_s23 = scalar_lea.vmem %s4463_s12, 512 }
 0x124   : > { %p4459_p8 = scmp.ne.s32.totalorder %s950_s17, %s4458_s27  ;;  %p4465_p4 = scmp.lt.s32.totalorder %s950_s17, %s4463_s12 }
 0x125   : > { %s948_s28 = scalar_lea.hbm %s5821_s25, %s5062_s3  ;;  %p4466_p11 = scmp.lt.s32.totalorder %s4464_s23, %s4458_s27 }
 0x126   : > { %p4460_p9 = pnand %p4459_p8, %p4972_p12 }
 0x127   : > { %p4467_p5 = por %p4466_p11, %p4465_p4 }
 0x128   : > { %p4461_p7 = pneg %p4460_p9 }
 0x12a   : > { %p4468_p3 = pnand %p4467_p5, %p4461_p7 }
 0x12c   : > { %4471 = shalt.err (!%p4468_p3)
}
 0x12d   : > { %s5822_s29 = scalar_lea.sflag [#allocation22], %s5039_s21  ;;  %s5823_s6 = sld [smem:[#allocation78_spill]] }
 0x12e   : > { %3846 = dma.hbm_to_vmem [thread:$0]  (%p4972_p12), %s948_s28, 256, %s950_s17, %s5822_s29, %s5815_s4, %s5815_s4, %s5814_s16  }
 0x12f   : > { %s987_s14 = scalar_lea.vmem [#allocation26], %s5056_s26  ;;  %s4726_s9 = smov [#allocation26]  }
 0x130   : > { %s994_s22 = sshll.u32 %s987_s14, 4  ;;  %s4488_s27 = sshll.u32 %s4726_s9, 4  ;;  %s995_s22 = int_to_ptr.vmem [resolvable:$true] %s994_s22  ;;  %s4489_s27 = int_to_ptr.vmem [resolvable:$false] %s4488_s27 }
 0x131   : > { %s4484_s25 = scalar_lea.vmem %s995_s22, 16  ;;  %s4490_s1 = scalar_lea.vmem %s4489_s27, 32 }
 0x132   : > { %p4485_p6 = scmp.ne.s32.totalorder %s995_s22, %s4484_s25  ;;  %p4491_p2 = scmp.lt.s32.totalorder %s995_s22, %s4489_s27 }
 0x133   : > { %s992_s8 = scalar_lea.hbm %s5823_s6, %s5080_s0  ;;  %p4492_p1 = scmp.lt.s32.totalorder %s4490_s1, %s4484_s25 }
 0x134   : > { %p4486_p10 = pnand %p4485_p6, %p4972_p12 }
 0x135   : > { %p4493_p0 = por %p4492_p1, %p4491_p2 }
 0x136   : > { %p4487_p13 = pneg %p4486_p10 }
 0x138   : > { %p4494_p8 = pnand %p4493_p0, %p4487_p13 }
 0x13a   : > { %4497 = shalt.err (!%p4494_p8)
}
 0x13b   : > { %s5824_s16 = scalar_lea.sflag [#allocation25], %s5039_s21  ;;  %s5825_s17 = sld [smem:[#allocation79_spill]] }
 0x13c   : > { %3848 = dma.hbm_to_vmem [thread:$0]  (%p4972_p12), %s992_s8, 16, %s995_s22, %s5824_s16  }
 0x13d   : > { %s1021_s23 = scalar_lea.vmem [#allocation29], %s5056_s26  ;;  %s4727_s5 = smov [#allocation29]  }
 0x13e   : > { %s1028_s29 = sshll.u32 %s1021_s23, 4  ;;  %s4514_s6 = sshll.u32 %s4727_s5, 4  ;;  %s1029_s29 = int_to_ptr.vmem [resolvable:$true] %s1028_s29  ;;  %s4515_s6 = int_to_ptr.vmem [resolvable:$false] %s4514_s6 }
 0x13f   : > { %s4510_s3 = scalar_lea.vmem %s1029_s29, 16  ;;  %s4516_s14 = scalar_lea.vmem %s4515_s6, 32 }
 0x140   : > { %p4511_p9 = scmp.ne.s32.totalorder %s1029_s29, %s4510_s3  ;;  %p4517_p11 = scmp.lt.s32.totalorder %s1029_s29, %s4515_s6 }
 0x141   : > { %s1026_s12 = scalar_lea.hbm %s5825_s17, %s5080_s0  ;;  %p4518_p5 = scmp.lt.s32.totalorder %s4516_s14, %s4510_s3 }
 0x142   : > { %p4512_p7 = pnand %p4511_p9, %p4972_p12 }
 0x143   : > { %p4519_p3 = por %p4518_p5, %p4517_p11 }
 0x144   : > { %p4513_p4 = pneg %p4512_p7 }
 0x146   : > { %p4520_p6 = pnand %p4519_p3, %p4513_p4 }
 0x148   : > { %4523 = shalt.err (!%p4520_p6)
}
 0x149   : > { %s5826_s8 = scalar_lea.sflag [#allocation28], %s5039_s21  ;;  %s5827_s9 = sld [smem:[#allocation80_spill]] }
 0x14a   : > { %3850 = dma.hbm_to_vmem [thread:$0]  (%p4972_p12), %s1026_s12, 16, %s1029_s29, %s5826_s8  }
 0x14b   : > { %s1055_s1 = scalar_lea.vmem [#allocation32], %s5056_s26  ;;  %s4728_s28 = smov [#allocation32]  }
 0x14c   : > { %s1062_s16 = sshll.u32 %s1055_s1, 4  ;;  %s4540_s17 = sshll.u32 %s4728_s28, 4  ;;  %s1063_s16 = int_to_ptr.vmem [resolvable:$true] %s1062_s16  ;;  %s4541_s17 = int_to_ptr.vmem [resolvable:$false] %s4540_s17 }
 0x14d   : > { %s4536_s4 = scalar_lea.vmem %s1063_s16, 16  ;;  %s4542_s23 = scalar_lea.vmem %s4541_s17, 32 }
 0x14e   : > { %p4537_p10 = scmp.ne.s32.totalorder %s1063_s16, %s4536_s4  ;;  %p4543_p1 = scmp.lt.s32.totalorder %s1063_s16, %s4541_s17 }
 0x14f   : > { %s1060_s27 = scalar_lea.hbm %s5827_s9, %s5080_s0  ;;  %p4544_p0 = scmp.lt.s32.totalorder %s4542_s23, %s4536_s4 }
 0x150   : > { %p4538_p13 = pnand %p4537_p10, %p4972_p12 }
 0x151   : > { %p4545_p8 = por %p4544_p0, %p4543_p1 }
 0x152   : > { %p4539_p2 = pneg %p4538_p13 }
 0x154   : > { %p4546_p9 = pnand %p4545_p8, %p4539_p2 }
 0x156   : > { %4549 = shalt.err (!%p4546_p9)
}
 0x157   : > { %3852 = dma.hbm_to_vmem [thread:$0]  (%p4972_p12), %s1060_s27, 16, %s1063_s16, %s1036_s24  }
 0x158 PF: > { %s5828_s26 = sld [smem:[#allocation61_spill]] }
 0x15e   : > { %p5829_p7 = scmp.ne.s32.totalorder %s5828_s26, 0 }
 0x15f   : > { %s5830_s0 = sld [smem:[#allocation52_spill]] (!%p5829_p7) }
 0x160   : > { %1071 = sbr.rel (%p5829_p7) target bundleno = 4430 (0x114e), region = 116 }
 0x165   : > { %p5831_p4 = scmp.eq.s32.totalorder %s5830_s0, 0 }
 0x167   : > { %4621 = dma.done.wait (%p5831_p4), [#allocation4], 128   ;;  %p5832_p11 = pmov %p5831_p4 }
 0x168   : > { %s5833_s12 = sld [smem:[#allocation48_spill]]  ;;  %s5259_s3 = sand.u32 1, %s5830_s0  }
 0x169   : > { %4623 = vsyncadd (%p5832_p11), [#allocation4], 4294967168  ;;  %s5834_s29 = sld [smem:[#allocation55_spill]]  ;;  %s1078_s21 = scalar_lea.sflag [#allocation7], %s5259_s3 }
 0x16e   : > { %s5262_s19 = sand.u32 1, %s5833_s12  }
 0x16f   : > { %p5835_p12 = scmp.ne.s32.totalorder %s5834_s29, 0 }
 0x171   : > { %4625 = dma.done.wait (%p5835_p12), %s1078_s21, 144  }
 0x172   : > { %4627 = vsyncadd (%p5835_p12), %s1078_s21, 4294967152  ;;  %s3488_s5 = sshll.u32 %s5262_s19, 3  ;;  %p5836_p5 = pmov %p5831_p4 }
 0x173   : > { %s5271_s6 = scalar_lea.vmem [#allocation8], %s3488_s5 }
 0x174   : > { %4629 = dma.done.wait (%p5836_p5), [#allocation10], 48   ;;  %p5837_p3 = pmov %p5831_p4 }
 0x175   : > { %s5838_s14 = sld [smem:[#allocation45_spill]]  ;;  %s1103_s9 = scalar_lea.sflag [#allocation13], %s5259_s3 }
 0x176   : > { %4631 = vsyncadd (%p5837_p3), [#allocation10], 4294967248  ;;  %s5839_s8 = sld [smem:[#allocation58_spill]] }
 0x17b   : > { %s5278_s22 = sand.u32 1, %s5838_s14  }
 0x17c   : > { %s5281_s25 = sshll.u32 %s5278_s22, 4  ;;  %p5840_p6 = scmp.ne.s32.totalorder %s5839_s8, 0 }
 0x17e   : > { %4633 = dma.done.wait (%p5840_p6), %s1103_s9, 512  }
 0x17f   : > { %4635 = vsyncadd (%p5840_p6), %s1103_s9, 4294966784  ;;  %s1121_s16 = scalar_lea.sflag [#allocation16], %s5259_s3 }
 0x180   : > { %4637 = dma.done.wait (%p5840_p6), %s1121_s16, 32  }
 0x181   : > { %4639 = vsyncadd (%p5840_p6), %s1121_s16, 4294967264  ;;  %s1137_s17 = scalar_lea.sflag [#allocation19], %s5259_s3 }
 0x182   : > { %4641 = dma.done.wait (%p5840_p6), %s1137_s17, 272  }
 0x183   : > { %4643 = vsyncadd (%p5840_p6), %s1137_s17, 4294967024  ;;  %s5304_s26 = scalar_lea.vmem [#allocation20], %s5281_s25  ;;  %s1154_s0 = scalar_lea.sflag [#allocation22], %s5259_s3 }
 0x184   : > { %4645 = dma.done.wait (%p5840_p6), %s1154_s0, 272  }
 0x185   : > { %4647 = vsyncadd (%p5840_p6), %s1154_s0, 4294967024  ;;  %s1171_s21 = scalar_lea.sflag [#allocation25], %s5259_s3 }
 0x186   : > { %4649 = dma.done.wait (%p5840_p6), %s1171_s21, 32  }
 0x187   : > { %4651 = vsyncadd (%p5840_p6), %s1171_s21, 4294967264  ;;  %s1187_s9 = scalar_lea.sflag [#allocation28], %s5259_s3 }
 0x188   : > { %4653 = dma.done.wait (%p5840_p6), %s1187_s9, 32  }
 0x189   : > { %4655 = vsyncadd (%p5840_p6), %s1187_s9, 4294967264  ;;  %s1203_s0 = scalar_lea.sflag [#allocation31], %s5259_s3 }
 0x18a   : > { %4657 = dma.done.wait (%p5840_p6), %s1203_s0, 32  }
 0x18b   : > { %4659 = vsyncadd (%p5840_p6), %s1203_s0, 4294967264  ;;  %s5841_s21 = sld [smem:[#allocation50_spill]]  ;;  %s1213_s11 = scalar_lea.vmem [#allocation32], %s5278_s22 }
 0x18c   : > { %s5842_s14 = sld [smem:[#allocation49_spill]]  ;;  %s1354_s13 = scalar_lea.vmem [#allocation33], %s5262_s19 }
 0x18d   : > { %s5843_s3 = sld [smem:[#allocation62_spill]] }
 0x18e   : > { %s5844_s8 = sld [smem:[#allocation68_spill]] }
 0x18f   : > { %s5845_s27 = sld [smem:[#allocation77_spill]] }
 0x191   : > { %p1355_p10 = scmp.lt.s32.totalorder %s5841_s21, 1 }
 0x192   : > { %p1359_p13 = scmp.lt.s32.totalorder %s5842_s14, 1  ;;  %p3500_p2 = scmp.ne.s32.totalorder %s5842_s14, 0 }
 0x193   : > { %s5893_s21 = smov (!%p1355_p10, %s5841_s21), 1 }
 0x194   : > { %s1360_s9 = scalar_select %p1359_p13, %s5842_s14, 1 }
 0x195   : > { %s3495_s16 = sshll.u32 %s5893_s21, 3  ;;  %1373 = sbr.rel (%p3500_p2) target bundleno = 615 (0x267), region = 196 }
 0x196   : > { %s1358_s5 = scalar_lea.vmem %s5843_s3, %s3495_s16  ;;  %s3576_s12 = sshll.u32 %s1360_s9, 4 }
 0x197   : > { %s5343_s0 = scalar_lea.vmem %s5844_s8, %s3576_s12  ;;  %s3577_s1 = sshll.u32 %s1360_s9, 5 }
 0x198   : > { %s5348_s10 = scalar_lea.vmem %s5845_s27, %s3577_s1 }
 0x19a   : > { %v1376_v0 = vld [vmem:[#allocation9] sm:$0x3]  ;;  %vm1388_vm0 = vcmask 1041408   ;;  %v4729_v2 = vmov 0.0   ;;  %vm4730_vm1 = vmmov 0   ;;  %vm1384_vm2 = vcmask 31744  }
 0x19b   : > { %v1374_v1 = vld [vmem:[%s1358_s5] sm:$0xff]  ;;  %3645 = vmatprep.subr.bf16.mxu0 %v4729_v2  ;;  %v1390_v3 = vsel %vm1388_vm0, %v1376_v0, 0  ;;  %3647 = vmatprep.mubr.msk.bf16.mxu0 %vm4730_vm1, %v4729_v2  ;;  %v1433_v8 = vld [vmem:[#allocation3] sm:$0xff]  ;;  %vm1435_vm3 = vcmask 261120  }
 0x19c   : > { %v1375_v4 = vpack.c.bf16 %v1374_v1, %v1374_v1  ;;  %3646 = vmatpush3.bf16.msra.mxu0 %v1390_v3  ;;  %v3501_v5 = vld [vmem:[#allocation11] ss:$0 sm:$0xff] }
 0x19f   : > { %3648 = vmatmul.mubr.msk.bf16.vlgmr.msra.gmra.mxu0 %vm1384_vm2, %v1375_v4 }
 0x25f   : > { %v1426_v6 = vpop.f32.mrf.mxu0 }
 0x260   : > { %v1427_v7 = vadd.f32 %v3501_v5, %v1426_v6 }
 0x261   : > { %v3649_v9 = vpop.f32.mrf.mxu0 }
 0x262   : > { %v1432_v10 = vmul.f32 5.656854, %v1427_v7 }
 0x263   : > { %v1429_v11 = vpop.f32.mrf.mxu0 }
 0x264   : > { %v1434_v12 = vadd.f32 %v1433_v8, %v1432_v10 }
 0x265   : > { %v3650_v13 = vpop.f32.mrf.mxu0 }
 0x266   : > { %1436 = vst.msk [vmem:[#allocation2] sm:$0xff] %vm1435_vm3, %v1434_v12 }
 0x267 PF: > { %v4000_v14 = vld [vmem:[%s5343_s0 + $0x8] sm:$0xff]   ;;  %v4731_v15 = vmov 0.0   ;;  %v4001_v16 = vld [vmem:[%s5343_s0] sm:$0xff]   ;;  %vm4732_vm4 = vmmov 0   ;;  %vm1462_vm5 = vcmask 261120   ;;  %s5846_s24 = scalar_lea.vmem [#allocation12], %s5281_s25  ;;  %v1644_v42 = vlaneseq }
 0x268   : > { %3651 = vmatprep.subr.bf16.mxu1 %v4731_v15  ;;  %3667 = vmatprep.subr.bf16.mxu0 %v4731_v15  ;;  %v4002_v18 = vld [vmem:[%s5846_s24 + $0x8] sm:$0xff]   ;;  %s5847_s27 = smov %s5846_s24  ;;  %s5848_s1 = scalar_lea.vmem [#allocation15], %s5278_s22  ;;  %vm1649_vm6 = vcmask 64512   ;;  %vm1711_vm7 = vcmask 1043456   ;;  %vm2429_vm8 = vcmask 523264  }
 0x269   : > { %3652 = vmatpush3.bf16.msra.mxu1 %v4000_v14  ;;  %3655 = vmatprep.mubr.msk.bf16.mxu1 %vm4732_vm4, %v4731_v15  ;;  %v4003_v20 = vld [vmem:[%s5847_s27] sm:$0xff]   ;;  %s5849_s4 = scalar_lea.vmem [#allocation17], %s5278_s22  ;;  %s4733_s28 = smov 120   ;;  %v1645_v45 = vshrl.u32 %v1644_v42, 7 }
 0x26a   : > { %3653 = vmatprep.subr.bf16.mxu1 %v4731_v15  ;;  %3671 = vmatprep.mubr.msk.bf16.mxu0 %vm4732_vm4, %v4731_v15  ;;  %v3503_v23 = vld [vmem:[%s5848_s1] ss:$0 sm:$0xff]  ;;  %s5850_s23 = scalar_lea.vmem [#allocation14], %s5281_s25  ;;  %s5852_s29 = scalar_lea.vmem [#allocation6], %s5262_s19 }
 0x26b   : > { %v3507_v26 = vld [vmem:[%s5849_s4] ss:$0 sm:$0xff]  ;;  %s5851_s12 = smov %s5850_s23  ;;  %v1646_v47 = vsub.s32 0, %v1645_v45  ;;  %s5853_s5 = scalar_lea.vmem [#allocation18], %s5278_s22 }
 0x26c   : > { %v4004_v37 = vld [vmem:[%s5850_s23 + $0x8] sm:$0xff]   ;;  %s4734_s14 = smov 112   ;;  %s4735_s16 = smov 104  }
 0x26d   : > { %v5359_v17 = vld [vmem:[#allocation2] sm:$0xff]  ;;  %3654 = vmatpush3.bf16.msra.mxu1 %v4001_v16  ;;  %3668 = vmatpush3.bf16.msra.mxu0 %v4004_v37  ;;  %s5855_s17 = scalar_lea.vmem [#allocation23], %s5281_s25  ;;  %s5857_s9 = scalar_lea.vmem [#allocation27], %s5278_s22 }
 0x26e   : > { %v1438_v19 = vpack.c.bf16 %v5359_v17, %v5359_v17  ;;  %3659 = vmatprep.subr.bf16.mxu1 %v4731_v15  ;;  %v4005_v38 = vld [vmem:[%s5851_s12] sm:$0xff]   ;;  %3669 = vmatprep.subr.bf16.mxu0 %v4731_v15  ;;  %s5856_s21 = smov %s5855_s17  ;;  %s5858_s3 = scalar_lea.vmem [#allocation29], %s5278_s22 }
 0x26f   : > { %v1636_v43 = vld [vmem:[%s5852_s29] sm:$0x1]  ;;  %s5859_s25 = scalar_lea.vmem [#allocation24], %s5278_s22  ;;  %s5860_s8 = scalar_lea.vmem [#allocation26], %s5278_s22 }
 0x270   : > { %3656 = vmatmul.mubr.msk.bf16.vlgmr.msra.gmra.mxu1 %vm1462_vm5, %v1438_v19  ;;  %v3515_v44 = vadd.f32 -1.0, %v1636_v43  ;;  %v3511_v6 = vld [vmem:[%s5853_s5] ss:$0 sm:$0xff]  ;;  %s5862_s0 = sld [smem:[#allocation49_spill]] }
 0x271   : > { %3660 = vmatpush3.bf16.msra.mxu1 %v4002_v18  ;;  %3663 = vmatprep.mubr.msk.bf16.mxu1 %vm4732_vm4, %v4731_v15 }
 0x272   : > { %3661 = vmatprep.subr.bf16.mxu1 %v4731_v15  ;;  %3670 = vmatpush3.bf16.msra.mxu0 %v4005_v38  ;;  %v1638_v46 = vmul.f32 1e+30, %v3515_v44 }
 0x273   : > { %3681 = vmatprep.subr.bf16.mxu0 %v4731_v15 }
 0x274   : > { %v5414_v48 = vrot.slane %v1638_v46, %v1646_v47 }
 0x275   : > { %3662 = vmatpush3.bf16.msra.mxu1 %v4003_v20  ;;  %3672 = vmatmul.mubr.msk.bf16.vlgmr.msra.gmra.mxu0 %vm1462_vm5, %v1438_v19 }
 0x276   : > { %3675 = vmatprep.subr.bf16.mxu1 %v4731_v15  ;;  %3683 = vmatprep.mubr.msk.bf16.mxu0 %vm4732_vm4, %v4731_v15  ;;  %p3543_p1 = scmp.ne.s32.totalorder %s5862_s0, 1 }
 0x277   : > { %s5863_s1 = sld [smem:[#allocation81_spill]] (!%p3543_p1) }
 0x278   : > { %3664 = vmatmul.mubr.msk.bf16.vlgmr.msra.gmra.mxu1 %vm1462_vm5, %v1438_v19 }
 0x279   : > { %3677 = vmatprep.mubr.msk.bf16.mxu1 %vm4732_vm4, %v4731_v15 }
 0x330   : > { %v1500_v21 = vpop.f32.mrf.mxu1 }
 0x331   : > { %v1501_v27 = vadd.f32 %v3503_v23, %v1500_v21  ;;  %v1640_v21 = vld [vmem:[%s5304_s26 + $0x4] sm:$0xf] }
 0x332   : > { %v3657_v22 = vpop.f32.mrf.mxu1 }
 0x333   : > { %v1632_v31 = vmul.f32 0.35355338, %v1501_v27  ;;  %v1874_v22 = vsel %vm1711_vm7, %v1640_v21, 0  ;;  %v1639_v27 = vld [vmem:[%s5304_s26] sm:$0xf] }
 0x334   : > { %v1503_v24 = vpop.f32.mrf.mxu1 }
 0x335   : > { %v5389_v36 = vpack.c.bf16 %v1632_v31, %v1632_v31  ;;  %v1626_v0 = vpop.f32.mrf.mxu0 }
 0x336   : > { %v3658_v25 = vpop.f32.mrf.mxu1  ;;  %v1627_v7 = vadd.f32 %v3511_v6, %v1626_v0 }
 0x337   : > { %v3673_v1 = vpop.f32.mrf.mxu0 }
 0x338   : > { %v1563_v28 = vpop.f32.mrf.mxu1  ;;  %v5423_v8 = vpack.c.bf16 %v1627_v7, %v1627_v7 }
 0x339   : > { %v1564_v29 = vadd.f32 %v3507_v26, %v1563_v28  ;;  %v1629_v2 = vpop.f32.mrf.mxu0 }
 0x33a   : > { %v3665_v30 = vpop.f32.mrf.mxu1  ;;  %v1713_v9 = vsel %vm1711_vm7, %v5423_v8, 0 }
 0x33b   : > { %v5383_v32 = vpack.c.bf16 %v1564_v29, %v1564_v29  ;;  %v3674_v3 = vpop.f32.mrf.mxu0  ;;  %3682 = vmatpush3.bf16.msra.mxu0 %v1713_v9  ;;  %v1920_v30 = vsel %vm1711_vm7, %v1639_v27, 0 }
 0x33c   : > { %v1566_v33 = vpop.f32.mrf.mxu1  ;;  %3693 = vmatprep.subr.bf16.mxu0 %v4731_v15 }
 0x33d   : > { %1760 = vrot.lane.b32.xlu0 %v5383_v32, %s4733_s28  ;;  %v1654_v34 = vsel %vm1649_vm6, %v5383_v32, 0 }
 0x33e   : > { %v3666_v35 = vpop.f32.mrf.mxu1  ;;  %3676 = vmatpush3.bf16.xpose.msra.mxu1 %v1654_v34 }
 0x33f   : > { %3687 = vmatprep.subr.bf16.mxu1 %v4731_v15 }
 0x341   : > { %1757 = vrot.lane.b32.xlu0 %v5389_v36, %s4733_s28 }
 0x345   : > { %3678 = vmatmul.mubr.msk.bf16.vlgmr.msra.gmra.mxu1 %vm1649_vm6, %v5389_v36 }
 0x346   : > { %3689 = vmatprep.mubr.msk.bf16.mxu1 %vm4732_vm4, %v4731_v15 }
 0x3af   : > { %v1761_v39 = vpop.permute.xlu0 %1760 }
 0x3b0   : > { %v1766_v40 = vsel %vm1649_vm6, %v1761_v39, 0 }
 0x3b1   : > { %3688 = vmatpush3.bf16.xpose.msra.mxu1 %v1766_v40 }
 0x3b2   : > { %3699 = vmatprep.subr.bf16.mxu1 %v4731_v15 }
 0x3b3   : > { %v1758_v41 = vpop.permute.xlu0 %1757 }
 0x3b8   : > { %3690 = vmatmul.mubr.msk.bf16.vlgmr.msra.gmra.mxu1 %vm1649_vm6, %v1758_v41 }
 0x3b9   : > { %3701 = vmatprep.mubr.msk.bf16.mxu1 %vm4732_vm4, %v4731_v15  ;;  %3700 = vmatpush3.bf16.msra.mxu1 %v1874_v22 }
 0x3ba   : > { %3711 = vmatprep.subr.bf16.mxu1 %v4731_v15 }
 0x405   : > { %v1690_v49 = vpop.f32.mrf.mxu1 }
 0x406   : > { %v1691_v50 = vadd.f32 %v1690_v49, %v5414_v48 }
 0x407   : > { %v3679_v51 = vpop.f32.mrf.mxu1 }
 0x408   : > { %v1696_v52 = vsel %vm1649_vm6, %v1691_v50, -inf }
 0x409   : > { %1697 = vmax.xlane.f32.xlu1 %v1696_v52  ;;  %v1693_v53 = vpop.f32.mrf.mxu1 }
 0x40b   : > { %v3680_v54 = vpop.f32.mrf.mxu1 }
 0x478   : > { %v1802_v55 = vpop.f32.mrf.mxu1 }
 0x479   : > { %v1803_v56 = vadd.f32 %v1802_v55, %v5414_v48 }
 0x47a   : > { %v3691_v57 = vpop.f32.mrf.mxu1 }
 0x47b   : > { %v1808_v58 = vsel %vm1649_vm6, %v1803_v56, -inf }
 0x47c   : > { %1809 = vmax.xlane.f32.xlu1 %v1808_v58  ;;  %v1805_v59 = vpop.f32.mrf.mxu1 }
 0x47e   : > { %v3692_v60 = vpop.f32.mrf.mxu1 }
 0x492   : > { %v1698_v61 = vpop.xlane.xlu1 %1697 }
 0x493   : > { %v1699_v62 = vsub.f32 %v1691_v50, %v1698_v61 }
 0x495   : > { %v1700_v63 = vmul.f32 1.442695, %v1699_v62 }
 0x497   : > { %4012 = vpow2.f32 %v1700_v63 }
 0x4a4   : > { %v4013_v4 = vpop.eup %4012 }
 0x4a5   : > { %v1702_v5 = vsel %vm1649_vm6, %v4013_v4, 0.0 }
 0x4a6   : > { %1703 = vadd.xlane.f32.xlu0 %v1702_v5 }
 0x4bc   : > { %2024 = vrot.lane.b32.xlu0 %v5423_v8, %s4734_s14 }
 0x505   : > { %v1810_v10 = vpop.xlane.xlu1 %1809 }
 0x506   : > { %v1811_v11 = vsub.f32 %v1803_v56, %v1810_v10 }
 0x508   : > { %v1812_v12 = vmul.f32 1.442695, %v1811_v11 }
 0x50a   : > { %4014 = vpow2.f32 %v1812_v12 }
 0x517   : > { %v4015_v13 = vpop.eup %4014 }
 0x518   : > { %v1814_v14 = vsel %vm1649_vm6, %v4015_v13, 0.0 }
 0x519   : > { %1815 = vadd.xlane.f32.xlu1 %v1814_v14 }
 0x52a   : > { %1821 = vrot.lane.b32.xlu1 %v5423_v8, %s4733_s28 }
 0x52e   : > { %1964 = vrot.lane.b32.xlu1 %v5383_v32, %s4734_s14 }
 0x52f   : > { %v1704_v16 = vpop.xlane.xlu0 %1703 }
 0x530   : > { %4016 = vrcp.f32 %v1704_v16 }
 0x532   : > { %1962 = vrot.lane.b32.xlu1 %v5389_v36, %s4734_s14 }
 0x533   : > { %v2025_v31 = vpop.permute.xlu0 %2024 }
 0x534   : > { %v2030_v37 = vsel %vm1711_vm7, %v2025_v31, 0 }
 0x53d   : > { %v4017_v18 = vpop.eup %4016 }
 0x53e   : > { %v1706_v19 = vmul.f32 %v4017_v18, %v4013_v4 }
 0x540   : > { %v1707_v20 = vpack.c.bf16 %v1706_v19, %v1706_v19 }
 0x542   : > { %3684 = vmatmul.mubr.msk.bf16.vlgmr.msra.gmra.mxu0 %vm1649_vm6, %v1707_v20 }
 0x543   : > { %3695 = vmatprep.mubr.msk.bf16.mxu0 %vm4732_vm4, %v4731_v15 }
 0x5a2   : > { %v1816_v23 = vpop.xlane.xlu1 %1815 }
 0x5a3   : > { %4018 = vrcp.f32 %v1816_v23 }
 0x5a6   : > { %v1822_v24 = vpop.permute.xlu1 %1821 }
 0x5a7   : > { %v1827_v25 = vsel %vm1711_vm7, %v1822_v24, 0 }
 0x5a8   : > { %3694 = vmatpush3.bf16.msra.mxu0 %v1827_v25 }
 0x5a9   : > { %3705 = vmatprep.subr.bf16.mxu0 %v4731_v15 }
 0x5aa   : > { %v1965_v40 = vpop.permute.xlu1 %1964 }
 0x5ab   : > { %v1970_v44 = vsel %vm1649_vm6, %v1965_v40, 0 }
 0x5ae   : > { %v1963_v47 = vpop.permute.xlu1 %1962 }
 0x5b0   : > { %v4019_v26 = vpop.eup %4018 }
 0x5b1   : > { %v1818_v28 = vmul.f32 %v4019_v26, %v4015_v13 }
 0x5b3   : > { %v1819_v29 = vpack.c.bf16 %v1818_v28, %v1818_v28 }
 0x5b5   : > { %3696 = vmatmul.mubr.msk.bf16.vlgmr.msra.gmra.mxu0 %vm1649_vm6, %v1819_v29 }
 0x5b6   : > { %3706 = vmatpush3.bf16.msra.mxu0 %v1920_v30  ;;  %3707 = vmatprep.mubr.msk.bf16.mxu0 %vm4732_vm4, %v4731_v15 }
 0x5b7   : > { %3717 = vmatprep.subr.bf16.mxu0 %v4731_v15 }
 0x602   : > { %v1749_v33 = vpop.f32.mrf.mxu0 }
 0x603   : > { %v1755_v34 = vpack.c.bf16 %v1749_v33, %v1749_v33 }
 0x604   : > { %v3685_v35 = vpop.f32.mrf.mxu0 }
 0x605   : > { %3708 = vmatmul.mubr.msk.bf16.vlgmr.msra.gmra.mxu0 %vm1649_vm6, %v1755_v34  ;;  %v1642_v34 = vld [vmem:[%s5304_s26 + $0xc] sm:$0xf] }
 0x606   : > { %3718 = vmatpush3.bf16.msra.mxu0 %v2030_v37  ;;  %v1752_v38 = vpop.f32.mrf.mxu0  ;;  %3719 = vmatprep.mubr.msk.bf16.mxu0 %vm4732_vm4, %v4731_v15  ;;  %v2235_v35 = vsel %vm1711_vm7, %v1642_v34, 0 }
 0x607   : > { %3729 = vmatprep.subr.bf16.mxu0 %v4731_v15 }
 0x608   : > { %v3686_v39 = vpop.f32.mrf.mxu0 }
 0x675   : > { %v1863_v41 = vpop.f32.mrf.mxu0 }
 0x676   : > { %v1869_v42 = vpack.c.bf16 %v1863_v41, %v1863_v41 }
 0x677   : > { %v3697_v43 = vpop.f32.mrf.mxu0 }
 0x678   : > { %3702 = vmatmul.mubr.msk.bf16.vlgmr.msra.gmra.mxu1 %vm1649_vm6, %v1869_v42 }
 0x679   : > { %3712 = vmatpush3.bf16.xpose.msra.mxu1 %v1970_v44  ;;  %v1866_v45 = vpop.f32.mrf.mxu0  ;;  %3713 = vmatprep.mubr.msk.bf16.mxu1 %vm4732_vm4, %v4731_v15 }
 0x67a   : > { %3723 = vmatprep.subr.bf16.mxu1 %v4731_v15 }
 0x67b   : > { %v3698_v46 = vpop.f32.mrf.mxu0 }
 0x680   : > { %3714 = vmatmul.mubr.msk.bf16.vlgmr.msra.gmra.mxu1 %vm1649_vm6, %v1963_v47 }
 0x681   : > { %3725 = vmatprep.mubr.msk.bf16.mxu1 %vm4732_vm4, %v4731_v15 }
 0x6c5   : > { %v5461_v49 = vpop.f32.mrf.mxu0 }
 0x6c7   : > { %v3709_v50 = vpop.f32.mrf.mxu0 }
 0x6c9   : > { %v1959_v51 = vpop.f32.mrf.mxu0 }
 0x6cb   : > { %v3710_v52 = vpop.f32.mrf.mxu0 }
 0x738   : > { %v1910_v53 = vpop.f32.mrf.mxu1 }
 0x73a   : > { %v3703_v54 = vpop.f32.mrf.mxu1 }
 0x73c   : > { %v1913_v55 = vpop.f32.mrf.mxu1 }
 0x73e   : > { %v3704_v56 = vpop.f32.mrf.mxu1 }
 0x740   : > { %v2006_v57 = vpop.f32.mrf.mxu1 }
 0x741   : > { %v2007_v58 = vadd.f32 %v2006_v57, %v5414_v48 }
 0x742   : > { %v3715_v59 = vpop.f32.mrf.mxu1 }
 0x743   : > { %v2012_v60 = vsel %vm1649_vm6, %v2007_v58, -inf }
 0x744   : > { %2013 = vmax.xlane.f32.xlu1 %v2012_v60  ;;  %v2009_v61 = vpop.f32.mrf.mxu1 }
 0x746   : > { %v3716_v62 = vpop.f32.mrf.mxu1 }
 0x7cd   : > { %v2014_v63 = vpop.xlane.xlu1 %2013 }
 0x7ce   : > { %v2015_v0 = vsub.f32 %v2007_v58, %v2014_v63 }
 0x7d0   : > { %v2016_v1 = vmul.f32 1.442695, %v2015_v0  ;;  %v4006_v0 = vld [vmem:[%s5855_s17 + $0x8] sm:$0xff]  }
 0x7d2   : > { %4020 = vpow2.f32 %v2016_v1  ;;  %v4007_v1 = vld [vmem:[%s5856_s21] sm:$0xff]  }
 0x7df   : > { %v4021_v2 = vpop.eup %4020 }
 0x7e0   : > { %v2018_v3 = vsel %vm1649_vm6, %v4021_v2, 0.0 }
 0x7e1   : > { %2019 = vadd.xlane.f32.xlu0 %v2018_v3 }
 0x7f7   : > { %2122 = vrot.lane.b32.xlu0 %v5383_v32, %s4735_s16 }
 0x7fb   : > { %2120 = vrot.lane.b32.xlu0 %v5389_v36, %s4735_s16  ;;  %v1641_v36 = vld [vmem:[%s5304_s26 + $0x8] sm:$0xf]  ;;  %s5854_s26 = scalar_lea.vmem [#allocation21], %s5278_s22 }
 0x7fc   : > { %v2077_v11 = vsel %vm1711_vm7, %v1641_v36, 0  ;;  %v3528_v51 = vld [vmem:[%s5854_s26] ss:$0 sm:$0xff]  ;;  %v4008_v36 = vld [vmem:[%s5348_s10 + $0x18] sm:$0xff]   ;;  %s5864_s26 = sld [smem:[#allocation82_spill]] (!%p3543_p1) }
 0x7fd   : > { %3724 = vmatpush3.bf16.msra.mxu1 %v2077_v11  ;;  %v4009_v11 = vld [vmem:[%s5348_s10 + $0x10] sm:$0xff]  }
 0x7fe   : > { %3735 = vmatprep.subr.bf16.mxu1 %v4731_v15 }
 0x86a   : > { %v2020_v4 = vpop.xlane.xlu0 %2019 }
 0x86b   : > { %4022 = vrcp.f32 %v2020_v4 }
 0x86e   : > { %v2123_v7 = vpop.permute.xlu0 %2122 }
 0x86f   : > { %v2128_v10 = vsel %vm1649_vm6, %v2123_v7, 0  ;;  %v3530_v7 = vld [vmem:[%s5858_s3] ss:$0 sm:$0xff] }
 0x872   : > { %v2121_v32 = vpop.permute.xlu0 %2120 }
 0x878   : > { %v4023_v5 = vpop.eup %4022 }
 0x879   : > { %v2022_v6 = vmul.f32 %v4023_v5, %v4021_v2  ;;  %v3529_v5 = vld [vmem:[%s5857_s9] ss:$0 sm:$0xff] }
 0x87b   : > { %v2023_v9 = vpack.c.bf16 %v2022_v6, %v2022_v6 }
 0x87d   : > { %3720 = vmatmul.mubr.msk.bf16.vlgmr.msra.gmra.mxu0 %vm1649_vm6, %v2023_v9 }
 0x87e   : > { %3730 = vmatpush3.bf16.xpose.msra.mxu0 %v2128_v10  ;;  %3731 = vmatprep.mubr.msk.bf16.mxu0 %vm4732_vm4, %v4731_v15 }
 0x87f   : > { %3741 = vmatprep.subr.bf16.mxu0 %v4731_v15 }
 0x885   : > { %3732 = vmatmul.mubr.msk.bf16.vlgmr.msra.gmra.mxu0 %vm1649_vm6, %v2121_v32 }
 0x886   : > { %3743 = vmatprep.mubr.msk.bf16.mxu0 %vm4732_vm4, %v4731_v15  ;;  %3742 = vmatpush3.bf16.msra.mxu0 %v2235_v35 }
 0x887   : > { %3755 = vmatprep.subr.bf16.mxu0 %v4731_v15 }
 0x93d   : > { %v2066_v12 = vpop.f32.mrf.mxu0 }
 0x93e   : > { %v2072_v13 = vpack.c.bf16 %v2066_v12, %v2066_v12  ;;  %v4010_v12 = vld [vmem:[%s5348_s10 + $0x8] sm:$0xff]  }
 0x93f   : > { %v3721_v14 = vpop.f32.mrf.mxu0 }
 0x940   : > { %3726 = vmatmul.mubr.msk.bf16.vlgmr.msra.gmra.mxu1 %vm1649_vm6, %v2072_v13  ;;  %v4011_v13 = vld [vmem:[%s5348_s10] sm:$0xff]   ;;  %s5861_s10 = scalar_lea.vmem [#allocation30], %s5278_s22 }
 0x941   : > { %v2069_v16 = vpop.f32.mrf.mxu0  ;;  %3737 = vmatprep.mubr.msk.bf16.mxu1 %vm4732_vm4, %v4731_v15  ;;  %v3531_v14 = vld [vmem:[%s5859_s25] ss:$0 sm:$0xff] }
 0x943   : > { %v3722_v18 = vpop.f32.mrf.mxu0 }
 0x945   : > { %v2164_v19 = vpop.f32.mrf.mxu0 }
 0x946   : > { %v2165_v20 = vadd.f32 %v2164_v19, %v5414_v48  ;;  %v1957_v48 = vadd.f32 %v5461_v49, %v1910_v53 }
 0x947   : > { %v3733_v21 = vpop.f32.mrf.mxu0 }
 0x948   : > { %v2170_v22 = vsel %vm1649_vm6, %v2165_v20, -inf }
 0x949   : > { %2171 = vmax.xlane.f32.xlu0 %v2170_v22  ;;  %v2167_v23 = vpop.f32.mrf.mxu0 }
 0x94b   : > { %v3734_v24 = vpop.f32.mrf.mxu0 }
 0x9d2   : > { %v2172_v25 = vpop.xlane.xlu0 %2171 }
 0x9d3   : > { %v2173_v26 = vsub.f32 %v2165_v20, %v2172_v25 }
 0x9d5   : > { %v2174_v27 = vmul.f32 1.442695, %v2173_v26 }
 0x9d7   : > { %4024 = vpow2.f32 %v2174_v27 }
 0x9e4   : > { %v4025_v28 = vpop.eup %4024 }
 0x9e5   : > { %v2176_v29 = vsel %vm1649_vm6, %v4025_v28, 0.0 }
 0x9e6   : > { %2177 = vadd.xlane.f32.xlu1 %v2176_v29 }
 0x9f7   : > { %2182 = vrot.lane.b32.xlu1 %v5423_v8, %s4735_s16 }
 0xa00   : > { %v2113_v30 = vpop.f32.mrf.mxu1 }
 0xa01   : > { %v2119_v31 = vadd.f32 %v2113_v30, %v1957_v48 }
 0xa02   : > { %v3727_v33 = vpop.f32.mrf.mxu1 }
 0xa04   : > { %v2116_v37 = vpop.f32.mrf.mxu1 }
 0xa06   : > { %v3728_v38 = vpop.f32.mrf.mxu1 }
 0xa6f   : > { %v2178_v39 = vpop.xlane.xlu1 %2177 }
 0xa70   : > { %4026 = vrcp.f32 %v2178_v39 }
 0xa73   : > { %v2183_v40 = vpop.permute.xlu1 %2182 }
 0xa74   : > { %v2188_v41 = vsel %vm1711_vm7, %v2183_v40, 0 }
 0xa75   : > { %3736 = vmatpush3.bf16.msra.mxu1 %v2188_v41 }
 0xa76   : > { %3747 = vmatprep.subr.bf16.mxu1 %v4731_v15 }
 0xa7d   : > { %v4027_v8 = vpop.eup %4026 }
 0xa7e   : > { %v2180_v42 = vmul.f32 %v4027_v8, %v4025_v28 }
 0xa80   : > { %v2181_v43 = vpack.c.bf16 %v2180_v42, %v2180_v42 }
 0xa82   : > { %3738 = vmatmul.mubr.msk.bf16.vlgmr.msra.gmra.mxu1 %vm1649_vm6, %v2181_v43 }
 0xa83   : > { %3751 = vmatprep.mubr.msk.bf16.mxu1 %vm4732_vm4, %v4731_v15  ;;  %3748 = vmatpush3.bf16.msra.mxu1 %v4006_v0 }
 0xa84   : > { %3749 = vmatprep.subr.bf16.mxu1 %v4731_v15 }
 0xa87   : > { %3750 = vmatpush3.bf16.msra.mxu1 %v4007_v1 }
 0xb42   : > { %v2224_v44 = vpop.f32.mrf.mxu1 }
 0xb43   : > { %v2230_v45 = vpack.c.bf16 %v2224_v44, %v2224_v44  ;;  %v3541_v44 = vld [vmem:[%s5861_s10] ss:$0 sm:$0xff] }
 0xb44   : > { %v3739_v46 = vpop.f32.mrf.mxu1 }
 0xb45   : > { %3744 = vmatmul.mubr.msk.bf16.vlgmr.msra.gmra.mxu0 %vm1649_vm6, %v2230_v45  ;;  %v3542_v46 = vld [vmem:[%s1213_s11] ss:$0 sm:$0xff] }
 0xb46   : > { %v2227_v47 = vpop.f32.mrf.mxu1  ;;  %3763 = vmatprep.mubr.msk.bf16.mxu0 %vm4732_vm4, %v4731_v15  ;;  %3756 = vmatpush3.bf16.msra.mxu0 %v4008_v36 }
 0xb47   : > { %3757 = vmatprep.subr.bf16.mxu0 %v4731_v15 }
 0xb48   : > { %v3740_v49 = vpop.f32.mrf.mxu1 }
 0xb4a   : > { %3758 = vmatpush3.bf16.msra.mxu0 %v4009_v11 }
 0xb4b   : > { %3759 = vmatprep.subr.bf16.mxu0 %v4731_v15 }
 0xb4e   : > { %3760 = vmatpush3.bf16.msra.mxu0 %v4010_v12 }
 0xb4f   : > { %3761 = vmatprep.subr.bf16.mxu0 %v4731_v15  ;;  %v3535_v15 = vld [vmem:[%s5860_s8] ss:$0 sm:$0xff] }
 0xb52   : > { %3762 = vmatpush3.bf16.msra.mxu0 %v4011_v13 }
 0xc05   : > { %v2271_v50 = vpop.f32.mrf.mxu0 }
 0xc06   : > { %v2277_v52 = vadd.f32 %v2271_v50, %v2119_v31 }
 0xc07   : > { %v3745_v53 = vpop.f32.mrf.mxu0 }
 0xc08   : > { %v2285_v54 = vadd.f32 %v3528_v51, %v2277_v52 }
 0xc09   : > { %v2274_v55 = vpop.f32.mrf.mxu0 }
 0xc0a   : > { %v2286_v56 = vadd.f32 %v2285_v54, %v5359_v17 }
 0xc0b   : > { %v3746_v57 = vpop.f32.mrf.mxu0 }
 0xc0c   : > { %v2289_v58 = vsel %vm1462_vm5, %v2286_v56, 0.0 }
 0xc0d   : > { %2290 = vadd.xlane.f32.xlu1 %v2289_v58 }
 0xc96   : > { %v2291_v59 = vpop.xlane.xlu1 %2290 }
 0xc97   : > { %v2293_v60 = vmul.f32 0.03125, %v2291_v59 }
 0xc99   : > { %v2294_v61 = vsub.f32 %v2286_v56, %v2293_v60 }
 0xc9b   : > { %v2295_v62 = vmul.f32 %v2294_v61, %v2294_v61 }
 0xc9d   : > { %v2296_v63 = vsel %vm1462_vm5, %v2295_v62, 0.0 }
 0xc9e   : > { %2297 = vadd.xlane.f32.xlu0 %v2296_v63 }
 0xd27   : > { %v2298_v17 = vpop.xlane.xlu0 %2297 }
 0xd28   : > { %v2299_v2 = vmul.f32 0.03125, %v2298_v17 }
 0xd2a   : > { %v2300_v3 = vadd.f32 1e-05, %v2299_v2 }
 0xd2c   : > { %4028 = vrsqrt.f32 %v2300_v3 }
 0xd39   : > { %v4029_v4 = vpop.eup %4028 }
 0xd3a   : > { %v2302_v6 = vmul.f32 %v4029_v4, %v2294_v61 }
 0xd3c   : > { %v2309_v9 = vmul.f32 %v3529_v5, %v2302_v6 }
 0xd3e   : > { %v2316_v10 = vadd.f32 %v3530_v7, %v2309_v9 }
 0xd40   : > { %v2317_v32 = vpack.c.bf16 %v2316_v10, %v2316_v10 }
 0xd42   : > { %3752 = vmatmul.mubr.msk.bf16.vlgmr.msra.gmra.mxu1 %vm1462_vm5, %v2317_v32 }
 0xe02   : > { %v2378_v16 = vpop.f32.mrf.mxu1 }
 0xe03   : > { %v2379_v18 = vadd.f32 %v3531_v14, %v2378_v16 }
 0xe04   : > { %v3753_v19 = vpop.f32.mrf.mxu1 }
 0xe05   : > { %v2385_v20 = vmul.f32 0.70710677, %v2379_v18  ;;  %v2384_v24 = vmul.f32 0.5, %v2379_v18 }
 0xe06   : > { %v2381_v21 = vpop.f32.mrf.mxu1 }
 0xe07   : > { %4030 = verf.f32 %v2385_v20 }
 0xe08   : > { %v3754_v22 = vpop.f32.mrf.mxu1 }
 0xe14   : > { %v4031_v23 = vpop.eup %4030 }
 0xe15   : > { %v2387_v25 = vadd.f32 1.0, %v4031_v23 }
 0xe17   : > { %v2388_v26 = vmul.f32 %v2387_v25, %v2384_v24 }
 0xe19   : > { %v2389_v27 = vpack.c.bf16 %v2388_v26, %v2388_v26 }
 0xe1b   : > { %3764 = vmatmul.mubr.msk.bf16.vlgmr.msra.gmra.mxu0 %vm2429_vm8, %v2389_v27 }
 0xedb   : > { %v2467_v28 = vpop.f32.mrf.mxu0 }
 0xedc   : > { %v2468_v29 = vadd.f32 %v3535_v15, %v2467_v28 }
 0xedd   : > { %v3765_v48 = vpop.f32.mrf.mxu0 }
 0xede   : > { %v2473_v30 = vadd.f32 %v2468_v29, %v2316_v10 }
 0xedf   : > { %v2470_v31 = vpop.f32.mrf.mxu0 }
 0xee0   : > { %v2476_v33 = vsel %vm1462_vm5, %v2473_v30, 0.0 }
 0xee1   : > { %2477 = vadd.xlane.f32.xlu0 %v2476_v33  ;;  %v3766_v34 = vpop.f32.mrf.mxu0 }
 0xf6a   : > { %v2478_v35 = vpop.xlane.xlu0 %2477 }
 0xf6b   : > { %v2479_v37 = vmul.f32 0.03125, %v2478_v35 }
 0xf6d   : > { %v2480_v38 = vsub.f32 %v2473_v30, %v2479_v37 }
 0xf6f   : > { %v2481_v39 = vmul.f32 %v2480_v38, %v2480_v38 }
 0xf71   : > { %v2482_v40 = vsel %vm1462_vm5, %v2481_v39, 0.0 }
 0xf72   : > { %2483 = vadd.xlane.f32.xlu0 %v2482_v40 }
 0xffb   : > { %v2484_v41 = vpop.xlane.xlu0 %2483 }
 0xffc   : > { %v2485_v8 = vmul.f32 0.03125, %v2484_v41 }
 0xffe   : > { %v2486_v42 = vadd.f32 1e-05, %v2485_v8 }
0x1000   : > { %4032 = vrsqrt.f32 %v2486_v42 }
0x100d   : > { %v4033_v43 = vpop.eup %4032 }
0x100e   : > { %v2488_v45 = vmul.f32 %v4033_v43, %v2480_v38 }
0x1010   : > { %v2495_v47 = vmul.f32 %v3541_v44, %v2488_v45  ;;  %2507 = sbr.rel (%p3543_p1) target bundleno = 4403 (0x1133), region = 200 }
0x1012   : > { %v2502_v49 = vadd.f32 %v3542_v46, %v2495_v47 }
0x1014   : > { %2503 = vst.msk [vmem:[#allocation2] sm:$0xff] %vm1462_vm5, %v2502_v49 }
0x1015   : > { %v4034_v50 = vld [vmem:[%s5863_s1 + $0x18] sm:$0xff]   ;;  %v4736_v51 = vmov 0.0   ;;  %v4036_v53 = vld [vmem:[%s5863_s1 + $0x10] sm:$0xff]   ;;  %vm4737_vm9 = vmmov 0   ;;  %v2509_v55 = vmul.f32 0.70710677, %v2502_v49 }
0x1016   : > { %3767 = vmatprep.subr.bf16.mxu0 %v4736_v51  ;;  %3775 = vmatprep.subr.bf16.mxu1 %v4736_v51  ;;  %v4035_v52 = vld [vmem:[%s5863_s1 + $0x38] sm:$0xff]   ;;  %v4037_v54 = vld [vmem:[%s5863_s1 + $0x30] sm:$0xff]   ;;  %v2508_v56 = vmul.f32 0.5, %v2502_v49  ;;  %v4042_v5 = vld [vmem:[%s5863_s1 + $0x8] sm:$0xff]  }
0x1017   : > { %3768 = vmatpush3.bf16.msra.mxu0 %v4034_v50  ;;  %3771 = vmatprep.mubr.msk.bf16.mxu0 %vm4737_vm9, %v4736_v51  ;;  %4050 = verf.f32 %v2509_v55  ;;  %v2513_v59 = vld [vmem:[%s5271_s6] sm:$0xff]  ;;  %v4043_v7 = vld [vmem:[%s5863_s1 + $0x28] sm:$0xff]  }
0x1018   : > { %3776 = vmatpush3.bf16.msra.mxu1 %v4035_v52  ;;  %3769 = vmatprep.subr.bf16.mxu0 %v4736_v51  ;;  %v4038_v63 = vld [vmem:[%s5863_s1 + $0x58] sm:$0xff]   ;;  %v4040_v2 = vld [vmem:[%s5863_s1 + $0x50] sm:$0xff]   ;;  %v4044_v9 = vld [vmem:[%s5863_s1] sm:$0xff]  }
0x1019   : > { %3777 = vmatprep.subr.bf16.mxu1 %v4736_v51  ;;  %3779 = vmatprep.mubr.msk.bf16.mxu1 %vm4737_vm9, %v4736_v51  ;;  %v4039_v1 = vld [vmem:[%s5863_s1 + $0x78] sm:$0xff]   ;;  %v4041_v3 = vld [vmem:[%s5863_s1 + $0x70] sm:$0xff]   ;;  %v4045_v10 = vld [vmem:[%s5863_s1 + $0x20] sm:$0xff]  }
0x101a   : > { %v4046_v32 = vld [vmem:[%s5863_s1 + $0x48] sm:$0xff]   ;;  %v4048_v12 = vld [vmem:[%s5863_s1 + $0x40] sm:$0xff]  }
0x101b   : > { %3770 = vmatpush3.bf16.msra.mxu0 %v4036_v53  ;;  %v4047_v11 = vld [vmem:[%s5863_s1 + $0x68] sm:$0xff]   ;;  %v4049_v13 = vld [vmem:[%s5863_s1 + $0x60] sm:$0xff]  }
0x101c   : > { %3778 = vmatpush3.bf16.msra.mxu1 %v4037_v54  ;;  %3783 = vmatprep.subr.bf16.mxu0 %v4736_v51  ;;  %v3000_v53 = vld [vmem:[%s5864_s26] sm:$0x1] }
0x101d   : > { %3791 = vmatprep.subr.bf16.mxu1 %v4736_v51 }
0x1024   : > { %v4051_v57 = vpop.eup %4050 }
0x1025   : > { %v2511_v58 = vadd.f32 1.0, %v4051_v57 }
0x1027   : > { %v2512_v60 = vmul.f32 %v2511_v58, %v2508_v56 }
0x1029   : > { %v2514_v61 = vmul.f32 %v2513_v59, %v2512_v60 }
0x102b   : > { %v2547_v62 = vpack.c.bf16 %v2514_v61, %v2514_v61 }
0x102d   : > { %v2549_v0 = vshrl.u32 %v2547_v62, 16  ;;  %v2829_v36 = vrot.slane %v2547_v62, 1  ;;  %v2885_v14 = vrot.slane %v2547_v62, 2  ;;  %v2941_v16 = vrot.slane %v2547_v62, 3 }
0x102f   : > { %3772 = vmatmul.mubr.msk.bf16.vlgmr.msra.gmra.mxu0 %vm1462_vm5, %v2549_v0  ;;  %v2606_v17 = vrot.slane %v2549_v0, 1  ;;  %v2662_v4 = vrot.slane %v2549_v0, 2  ;;  %v2718_v6 = vrot.slane %v2549_v0, 3 }
0x1030   : > { %3784 = vmatpush3.bf16.msra.mxu0 %v4038_v63  ;;  %3787 = vmatprep.mubr.msk.bf16.mxu0 %vm4737_vm9, %v4736_v51 }
0x1031   : > { %3780 = vmatmul.mubr.msk.bf16.vlgmr.msra.gmra.mxu1 %vm1462_vm5, %v2606_v17  ;;  %3785 = vmatprep.subr.bf16.mxu0 %v4736_v51 }
0x1032   : > { %3792 = vmatpush3.bf16.msra.mxu1 %v4039_v1  ;;  %3795 = vmatprep.mubr.msk.bf16.mxu1 %vm4737_vm9, %v4736_v51 }
0x1033   : > { %3793 = vmatprep.subr.bf16.mxu1 %v4736_v51 }
0x1034   : > { %3786 = vmatpush3.bf16.msra.mxu0 %v4040_v2 }
0x1035   : > { %3799 = vmatprep.subr.bf16.mxu0 %v4736_v51 }
0x1036   : > { %3794 = vmatpush3.bf16.msra.mxu1 %v4041_v3 }
0x1037   : > { %3788 = vmatmul.mubr.msk.bf16.vlgmr.msra.gmra.mxu0 %vm1462_vm5, %v2662_v4  ;;  %3807 = vmatprep.subr.bf16.mxu1 %v4736_v51 }
0x1038   : > { %3800 = vmatpush3.bf16.msra.mxu0 %v4042_v5  ;;  %3803 = vmatprep.mubr.msk.bf16.mxu0 %vm4737_vm9, %v4736_v51 }
0x1039   : > { %3796 = vmatmul.mubr.msk.bf16.vlgmr.msra.gmra.mxu1 %vm1462_vm5, %v2718_v6  ;;  %3801 = vmatprep.subr.bf16.mxu0 %v4736_v51 }
0x103a   : > { %3808 = vmatpush3.bf16.msra.mxu1 %v4043_v7  ;;  %3811 = vmatprep.mubr.msk.bf16.mxu1 %vm4737_vm9, %v4736_v51 }
0x103b   : > { %3809 = vmatprep.subr.bf16.mxu1 %v4736_v51 }
0x103c   : > { %3802 = vmatpush3.bf16.msra.mxu0 %v4044_v9 }
0x103d   : > { %3815 = vmatprep.subr.bf16.mxu0 %v4736_v51 }
0x103e   : > { %3810 = vmatpush3.bf16.msra.mxu1 %v4045_v10 }
0x103f   : > { %3804 = vmatmul.mubr.msk.bf16.vlgmr.msra.gmra.mxu0 %vm1462_vm5, %v2547_v62  ;;  %3823 = vmatprep.subr.bf16.mxu1 %v4736_v51 }
0x1040   : > { %3816 = vmatpush3.bf16.msra.mxu0 %v4046_v32  ;;  %3819 = vmatprep.mubr.msk.bf16.mxu0 %vm4737_vm9, %v4736_v51 }
0x1041   : > { %3812 = vmatmul.mubr.msk.bf16.vlgmr.msra.gmra.mxu1 %vm1462_vm5, %v2829_v36  ;;  %3817 = vmatprep.subr.bf16.mxu0 %v4736_v51 }
0x1042   : > { %3824 = vmatpush3.bf16.msra.mxu1 %v4047_v11  ;;  %3827 = vmatprep.mubr.msk.bf16.mxu1 %vm4737_vm9, %v4736_v51 }
0x1043   : > { %3825 = vmatprep.subr.bf16.mxu1 %v4736_v51 }
0x1044   : > { %3818 = vmatpush3.bf16.msra.mxu0 %v4048_v12 }
0x1046   : > { %3826 = vmatpush3.bf16.msra.mxu1 %v4049_v13 }
0x1047   : > { %3820 = vmatmul.mubr.msk.bf16.vlgmr.msra.gmra.mxu0 %vm1462_vm5, %v2885_v14 }
0x1049   : > { %3828 = vmatmul.mubr.msk.bf16.vlgmr.msra.gmra.mxu1 %vm1462_vm5, %v2941_v16 }
0x10ef   : > { %v2600_v18 = vpop.f32.mrf.mxu0 }
0x10f1   : > { %v3773_v19 = vpop.f32.mrf.mxu0  ;;  %v2656_v20 = vpop.f32.mrf.mxu1 }
0x10f3   : > { %v2603_v21 = vpop.f32.mrf.mxu0  ;;  %v3781_v22 = vpop.f32.mrf.mxu1 }
0x10f5   : > { %v3774_v23 = vpop.f32.mrf.mxu0  ;;  %v2659_v24 = vpop.f32.mrf.mxu1 }
0x10f7   : > { %v3782_v25 = vpop.f32.mrf.mxu1  ;;  %v2712_v26 = vpop.f32.mrf.mxu0 }
0x10f9   : > { %v3789_v27 = vpop.f32.mrf.mxu0  ;;  %v2768_v15 = vpop.f32.mrf.mxu1 }
0x10fb   : > { %v2715_v28 = vpop.f32.mrf.mxu0  ;;  %v3797_v29 = vpop.f32.mrf.mxu1 }
0x10fd   : > { %v3790_v48 = vpop.f32.mrf.mxu0  ;;  %v2771_v30 = vpop.f32.mrf.mxu1 }
0x10ff   : > { %v3798_v31 = vpop.f32.mrf.mxu1  ;;  %v2822_v33 = vpop.f32.mrf.mxu0 }
0x1100   : > { %v2823_v45 = vadd.f32 %v2822_v33, %v2600_v18 }
0x1101   : > { %v3805_v34 = vpop.f32.mrf.mxu0  ;;  %v2879_v35 = vpop.f32.mrf.mxu1 }
0x1102   : > { %v2880_v42 = vadd.f32 %v2879_v35, %v2656_v20 }
0x1103   : > { %v2825_v37 = vpop.f32.mrf.mxu0  ;;  %v3813_v38 = vpop.f32.mrf.mxu1 }
0x1104   : > { %v2997_v51 = vadd.f32 %v2880_v42, %v2823_v45 }
0x1105   : > { %v3806_v39 = vpop.f32.mrf.mxu0  ;;  %v2882_v40 = vpop.f32.mrf.mxu1 }
0x1107   : > { %v3814_v41 = vpop.f32.mrf.mxu1  ;;  %v2935_v8 = vpop.f32.mrf.mxu0 }
0x1108   : > { %v2936_v46 = vadd.f32 %v2935_v8, %v2712_v26 }
0x1109   : > { %v3821_v43 = vpop.f32.mrf.mxu0  ;;  %v2991_v44 = vpop.f32.mrf.mxu1 }
0x110a   : > { %v2992_v47 = vadd.f32 %v2991_v44, %v2768_v15 }
0x110b   : > { %v2938_v49 = vpop.f32.mrf.mxu0  ;;  %v3829_v50 = vpop.f32.mrf.mxu1 }
0x110c   : > { %v2998_v52 = vadd.f32 %v2992_v47, %v2936_v46 }
0x110d   : > { %v3822_v54 = vpop.f32.mrf.mxu0  ;;  %v2994_v55 = vpop.f32.mrf.mxu1 }
0x110e   : > { %v2999_v56 = vadd.f32 %v2998_v52, %v2997_v51 }
0x110f   : > { %v3830_v57 = vpop.f32.mrf.mxu1 }
0x1110   : > { %v3001_v58 = vadd.f32 %v3000_v53, %v2999_v56 }
0x1112   : > { %v3568_v59 = vmul.f32 -1.442695, %v3001_v58 }
0x1114   : > { %4052 = vpow2.f32 %v3568_v59 }
0x1121   : > { %v4053_v60 = vpop.eup %4052 }
0x1122   : > { %v3005_v61 = vadd.f32 1.0, %v4053_v60 }
0x1124   : > { %4054 = vrcp.f32 %v3005_v61 }
0x1131   : > { %v4055_v62 = vpop.eup %4054 }
0x1132   : > { %3008 = vst [vmem:[%s1354_s13] sm:$0x1] %v4055_v62 }
0x1133 PF: > { %s5865_s17 = sld [smem:[#allocation50_spill]]  ;;  %s3022_s10 = sshll.u32 %s1354_s13, 4  ;;  %s3023_s10 = int_to_ptr.vmem [resolvable:$true] %s3022_s10 }
0x1134   : > { %s5866_s6 = sld [smem:[#allocation59_spill]]  ;;  %s3010_s0 = scalar_lea.sflag [#allocation5], %s5262_s19 }
0x1135   : > { %s5867_s25 = sld [smem:[#allocation83_spill]]  ;;  %s4550_s24 = scalar_lea.vmem %s3023_s10, 16 }
0x1136   : > { %p4551_p0 = scmp.ne.s32.totalorder %s3023_s10, %s4550_s24  ;;  %s4738_s27 = smov [#allocation33]  }
0x1137   : > { %s4554_s4 = sshll.u32 %s4738_s27, 4  ;;  %s4555_s4 = int_to_ptr.vmem [resolvable:$false] %s4554_s4 }
0x1138   : > { %s4556_s28 = scalar_lea.vmem %s4555_s4, 32  ;;  %p4557_p4 = scmp.lt.s32.totalorder %s3023_s10, %s4555_s4 }
0x1139   : > { %s3569_s21 = sshll.u32 %s5865_s17, 4  ;;  %p4558_p11 = scmp.lt.s32.totalorder %s4556_s28, %s4550_s24 }
0x113a   : > { %p5868_p8 = scmp.ne.s32.totalorder %s5866_s6, 0 }
0x113b   : > { %s3020_s8 = scalar_lea.hbm %s5867_s25, %s3569_s21  ;;  %p4559_p12 = por %p4558_p11, %p4557_p4 }
0x113c   : > { %p4552_p9 = pnand %p4551_p0, %p5868_p8 }
0x113e   : > { %p4553_p7 = pneg %p4552_p9 }
0x1140   : > { %p4560_p5 = pnand %p4559_p12, %p4553_p7 }
0x1142   : > { %4563 = shalt.err (!%p4560_p5)
}
0x1143   : > { %s4564_s11 = scalar_lea.hbm %s3020_s8, 16  ;;  %s4568_s22 = scalar_lea.hbm %s5867_s25, 32 }
0x1144   : > { %p4565_p3 = scmp.ne.s32.totalorder %s3020_s8, %s4564_s11  ;;  %p4569_p13 = scmp.lt.s32.totalorder %s3020_s8, %s5867_s25 }
0x1145   : > { %p4570_p2 = scmp.lt.s32.totalorder %s4568_s22, %s4564_s11 }
0x1146   : > { %p4566_p6 = pnand %p4565_p3, %p5868_p8 }
0x1147   : > { %p4571_p1 = por %p4570_p2, %p4569_p13 }
0x1148   : > { %p4567_p10 = pneg %p4566_p6 }
0x114a   : > { %p4572_p0 = pnand %p4571_p1, %p4567_p10 }
0x114c   : > { %4575 = shalt.err (!%p4572_p0)
}
0x114d   : > { %3875 = dma.vmem_to_hbm [thread:$0]  (%p5868_p8), %s3023_s10, 16, %s3020_s8, %s3010_s0  }
0x114e PF: > { %s5869_s29 = sld [smem:[#allocation51_spill]] }
0x114f   : > { %s5870_s5 = sld [smem:[#allocation47_spill]] }
0x1150   : > { %s5871_s14 = sld [smem:[#allocation60_spill]] }
0x1154   : > { %p3897_p9 = scmp.ge.s32.totalorder %s5869_s29, 2 }
0x1155   : > { %s3034_s16 = sand.u32 1, %s5870_s5  }
0x1156   : > { %p5872_p7 = scmp.ne.s32.totalorder %s5871_s14, 0  ;;  %s3035_s26 = scalar_lea.sflag [#allocation5], %s3034_s16 }
0x1158   : > { %p3888_p4 = pnand %p3897_p9, %p5872_p7 }
0x115a   : > { %p3889_p11 = pneg %p3888_p4 }
0x115c   : > { %4661 = dma.done.wait (%p3889_p11), %s3035_s26, 16  }
0x115d   : > { %4663 = vsyncadd (%p3889_p11), %s3035_s26, 4294967280  ;;  %s63_s3 = sadd.s32 1, %s5869_s29   ;;  %s5873_s5 = sld [smem:[#allocation45_spill]] }
0x115e   : > { %p60_p12 = scmp.ge.s32.totalorder %s63_s3, 6   ;;  %s5874_s26 = sld [smem:[#allocation46_spill]] }
0x115f   : > { %s5875_s27 = sld [smem:[#allocation56_spill]]  ;;  %s5880_s6 = smov %s4686_s2 }
0x1160   : > { %s5876_s28 = sld [smem:[#allocation48_spill]]  ;;  %s5882_s29 = smov %s4698_s7 }
0x1161   : > { %s5877_s17 = sld [smem:[#allocation57_spill]]  ;;  %s5883_s0 = smov %s4702_s30 }
0x1162   : > { %s5878_s21 = sld [smem:[#allocation53_spill]] }
0x1163   : > { %s5879_s9 = sld [smem:[#allocation54_spill]] }
0x1165   :  { %62 = sbr.rel (!%p60_p12) target bundleno = 48 (0x30), region = 370 }
0x1167   : > { %s5881_s2 = smov %s5877_s17 }
0x1168   : > { %s5884_s7 = smov %s5878_s21 }
0x1169   : > { %s5885_s30 = smov %s5879_s9 }
0x116a   :  { %3039 = vsyncpa [#allocation4], 1 }
0x116b   :  { %3041 = vsyncpa [#allocation4 + $0x1], 1 }
0x116c   :  { %3042 = vsyncpa [#allocation7], 1 }
0x116d   :  { %3044 = vsyncpa [#allocation7 + $0x1], 1 }
0x116e   :  { %3045 = vsyncpa [#allocation10], 1 }
0x116f   :  { %3046 = vsyncpa [#allocation13], 1 }
0x1170   :  { %3048 = vsyncpa [#allocation13 + $0x1], 1 }
0x1171   :  { %3049 = vsyncpa [#allocation16], 1 }
0x1172   :  { %3051 = vsyncpa [#allocation16 + $0x1], 1 }
0x1173   :  { %3052 = vsyncpa [#allocation19], 1 }
0x1174   :  { %3054 = vsyncpa [#allocation19 + $0x1], 1 }
0x1175   :  { %3055 = vsyncpa [#allocation22], 1 }
0x1176   :  { %3057 = vsyncpa [#allocation22 + $0x1], 1 }
0x1177   :  { %3058 = vsyncpa [#allocation25], 1 }
0x1178   :  { %3060 = vsyncpa [#allocation25 + $0x1], 1 }
0x1179   :  { %3061 = vsyncpa [#allocation28], 1 }
0x117a   :  { %3063 = vsyncpa [#allocation28 + $0x1], 1 }
0x117b   :  { %3064 = vsyncpa [#allocation31], 1 }
0x117c   :  { %3066 = vsyncpa [#allocation31 + $0x1], 1 }
0x117d   :  { %3067 = vsyncpa [#allocation5], 1 }
0x117e   :  { %3069 = vsyncpa [#allocation5 + $0x1], 1 }

</bundles_post_ra>
